<compile_context>
chip_gen: v6e
topology: v6e:2x2x1
jax: 0.10.0
libtpu: 0.0.40
codegen_flags: <defaults>
</compile_context>

<pallas_src>
import functools
import math

import jax
import jax.numpy as jnp
from jax.experimental import pallas as pl
from jax.experimental.pallas import tpu as pltpu

EPS = 1e-5          # norm_epsilon
SCAN_CHUNK = 8      # timesteps per scan chunk (= one f32 sublane group)


# ----------------------------- small math helpers ---------------------------
def _sigmoid(x):
    return 1.0 / (1.0 + jnp.exp(-x))


def _silu(x):
    return x * _sigmoid(x)


def _softplus(x):
    # numerically stable: max(x, 0) + log1p(exp(-|x|))
    return jnp.maximum(x, 0.0) + jnp.log1p(jnp.exp(-jnp.abs(x)))


def _rmsnorm(x, w):
    var = jnp.mean(x * x, axis=-1, keepdims=True)
    return x * jax.lax.rsqrt(var + EPS) * w


# ------------------------------- Pallas kernels ------------------------------
def _block_compute(hidden_ref, resid_ref, norm_w_ref,
                   in_proj_ref, conv_w_ref, conv_b_ref,
                   x_proj_ref, dt_w_ref, dt_b_ref,
                   A_logT_ref, D_ref, out_proj_ref,
                   delta_s, xc_s, b_s, c_s, y_s, h_s,
                   *, d_inner, d_state, dt_rank, d_conv, chunk):
    """Shared body: returns (resid_new, mixer_out), both (L, D) f32."""
    L = hidden_ref.shape[1]

    # residual add (residual_in_fp32) + RMSNorm (prenorm)
    resid = hidden_ref[0] + resid_ref[0]                      # (L, D) f32
    xn = _rmsnorm(resid, norm_w_ref[...])                     # (L, D) f32

    # in_proj (bf16 MXU, f32 acc) -> split into x (conv/scan) and z (gate)
    xz = jnp.dot(xn.astype(jnp.bfloat16), in_proj_ref[...],
                 preferred_element_type=jnp.float32)          # (L, 2*d_inner)
    x = xz[:, :d_inner]
    z = xz[:, d_inner:]

    # causal depthwise conv along L (kernel size d_conv), then SiLU
    cw = conv_w_ref[...]                                      # (d_conv, d_inner)
    row = jax.lax.broadcasted_iota(jnp.int32, (L, 1), 0)
    acc = x * cw[d_conv - 1:d_conv, :]                        # shift = 0 term
    for k in range(d_conv - 1):
        shift = d_conv - 1 - k                                # out[t] += w[k]*x[t-shift]
        shifted = jnp.where(row >= shift, pltpu.roll(x, shift, axis=0), 0.0)
        acc = acc + shifted * cw[k:k + 1, :]
    xc = _silu(acc + conv_b_ref[...])                         # (L, d_inner)

    # x_proj (bf16) -> (dt, B, C)
    x_dbl = jnp.dot(xc.astype(jnp.bfloat16), x_proj_ref[...],
                    preferred_element_type=jnp.float32)       # (L, dt_rank+2*d_state)
    dt = x_dbl[:, :dt_rank]

    # dt_proj (tiny K, keep f32) + stable softplus
    delta = _softplus(
        jnp.dot(dt, dt_w_ref[...], preferred_element_type=jnp.float32)
        + dt_b_ref[...])                                      # (L, d_inner)

    # stash scan inputs in VMEM scratch (sliced per chunk inside the loop)
    delta_s[...] = delta
    xc_s[...] = xc
    b_s[...] = x_dbl[:, dt_rank:dt_rank + d_state]            # (L, d_state)
    c_s[...] = x_dbl[:, dt_rank + d_state:]                   # (L, d_state)

    # hoisted invariants; state layout (d_state, d_inner): d_inner on lanes
    A_T = -jnp.exp(A_logT_ref[...])                           # (d_state, d_inner)
    Dp = D_ref[...]                                           # (1, d_inner)
    h_s[...] = jnp.zeros_like(h_s)                            # (d_state, d_inner)

    num_chunks = L // chunk

    @pl.loop(0, num_chunks)
    def _(ci):
        start = pl.multiple_of(ci * chunk, chunk)
        d_c = delta_s[pl.ds(start, chunk), :]                 # (T, d_inner)
        x_c = xc_s[pl.ds(start, chunk), :]                    # (T, d_inner)
        b_c = b_s[pl.ds(start, chunk), :]                     # (T, d_state)
        c_c = c_s[pl.ds(start, chunk), :]                     # (T, d_state)

        # per-chunk discretization (only T*d_state*d_inner live at once)
        dA = jnp.exp(d_c[:, None, :] * A_T[None, :, :])       # (T, d_state, d_inner)
        dBx = b_c[:, :, None] * (d_c * x_c)[:, None, :]       # (T, d_state, d_inner)
        cB = c_c[:, :, None]                                  # (T, d_state, 1)

        h = h_s[...]                                          # (d_state, d_inner)
        rows = []
        for t in range(chunk):                                # static, chunk == 8
            h = dA[t] * h + dBx[t]
            rows.append(jnp.sum(h * cB[t], axis=0, keepdims=True))  # (1, d_inner)
        h_s[...] = h

        y_c = jnp.concatenate(rows, axis=0) + Dp * x_c        # (T, d_inner)
        y_s[pl.ds(start, chunk), :] = y_c                     # one dense block store

    # gate with SiLU(z) and project back to d_model (bf16 MXU)
    y = y_s[...] * _silu(z)                                   # (L, d_inner)
    mix_out = jnp.dot(y.astype(jnp.bfloat16), out_proj_ref[...],
                      preferred_element_type=jnp.float32)     # (L, D)
    return resid, mix_out


def mamba_block_kernel(hidden_ref, resid_ref, norm_w_ref,
                       in_proj_ref, conv_w_ref, conv_b_ref,
                       x_proj_ref, dt_w_ref, dt_b_ref,
                       A_logT_ref, D_ref, out_proj_ref,
                       hidden_out_ref, resid_out_ref,
                       delta_s, xc_s, b_s, c_s, y_s, h_s,
                       *, d_inner, d_state, dt_rank, d_conv, chunk):
    resid_new, mix_out = _block_compute(
        hidden_ref, resid_ref, norm_w_ref, in_proj_ref, conv_w_ref, conv_b_ref,
        x_proj_ref, dt_w_ref, dt_b_ref, A_logT_ref, D_ref, out_proj_ref,
        delta_s, xc_s, b_s, c_s, y_s, h_s,
        d_inner=d_inner, d_state=d_state, dt_rank=dt_rank, d_conv=d_conv,
        chunk=chunk)
    resid_out_ref[0] = resid_new
    hidden_out_ref[0] = mix_out


def mamba_block_final_kernel(hidden_ref, resid_ref, norm_w_ref,
                             in_proj_ref, conv_w_ref, conv_b_ref,
                             x_proj_ref, dt_w_ref, dt_b_ref,
                             A_logT_ref, D_ref, out_proj_ref, norm_f_w_ref,
                             out_ref,
                             delta_s, xc_s, b_s, c_s, y_s, h_s,
                             *, d_inner, d_state, dt_rank, d_conv, chunk):
    # last layer: also fuses the final residual-add + RMSNorm (saves a full
    # memory-bound pass over (B, L, D))
    resid_new, mix_out = _block_compute(
        hidden_ref, resid_ref, norm_w_ref, in_proj_ref, conv_w_ref, conv_b_ref,
        x_proj_ref, dt_w_ref, dt_b_ref, A_logT_ref, D_ref, out_proj_ref,
        delta_s, xc_s, b_s, c_s, y_s, h_s,
        d_inner=d_inner, d_state=d_state, dt_rank=dt_rank, d_conv=d_conv,
        chunk=chunk)
    out_ref[0] = _rmsnorm(mix_out + resid_new, norm_f_w_ref[...])


# ------------------------------ pallas_call wrapper ---------------------------
def mamba_block_call(hidden, resid, p, dims, *, chunk=SCAN_CHUNK, final_norm_w=None):
    B, L, D = hidden.shape
    d_inner, d_state, dt_rank, d_conv = dims
    assert L % chunk == 0, "sequence length must be a multiple of the scan chunk"

    def full(shape):
        return pl.BlockSpec(shape, lambda b: (0, 0))

    act = pl.BlockSpec((1, L, D), lambda b: (b, 0, 0))

    in_specs = [
        act,                                                  # hidden
        act,                                                  # residual
        full((1, D)),                                         # norm weight
        full((D, 2 * d_inner)),                               # in_proj^T (bf16)
        full((d_conv, d_inner)),                              # conv weight
        full((1, d_inner)),                                   # conv bias
        full((d_inner, dt_rank + 2 * d_state)),               # x_proj^T (bf16)
        full((dt_rank, d_inner)),                             # dt_proj^T
        full((1, d_inner)),                                   # dt_proj bias
        full((d_state, d_inner)),                             # A_log (transposed)
        full((1, d_inner)),                                   # D
        full((d_inner, D)),                                   # out_proj^T (bf16)
    ]
    inputs = [hidden, resid, p["norm_w"], p["in_proj"], p["conv_w"], p["conv_b"],
              p["x_proj"], p["dt_w"], p["dt_b"], p["A_logT"], p["D"], p["out_proj"]]

    scratch = [pltpu.VMEM((L, d_inner), jnp.float32),         # delta
               pltpu.VMEM((L, d_inner), jnp.float32),         # conv/SiLU output
               pltpu.VMEM((L, d_state), jnp.float32),         # B
               pltpu.VMEM((L, d_state), jnp.float32),         # C
               pltpu.VMEM((L, d_inner), jnp.float32),         # scan output y
               pltpu.VMEM((d_state, d_inner), jnp.float32)]   # recurrence state h

    kw = dict(d_inner=d_inner, d_state=d_state, dt_rank=dt_rank,
              d_conv=d_conv, chunk=chunk)

    if final_norm_w is None:
        kernel = functools.partial(mamba_block_kernel, **kw)
        out_specs = (act, act)
        out_shape = (jax.ShapeDtypeStruct((B, L, D), jnp.float32),
                     jax.ShapeDtypeStruct((B, L, D), jnp.float32))
    else:
        kernel = functools.partial(mamba_block_final_kernel, **kw)
        in_specs = in_specs + [full((1, D))]
        inputs = inputs + [final_norm_w]
        out_specs = act
        out_shape = jax.ShapeDtypeStruct((B, L, D), jnp.float32)

    return pl.pallas_call(
        kernel,
        out_shape=out_shape,
        grid_spec=pltpu.PrefetchScalarGridSpec(
            num_scalar_prefetch=0, grid=(B,),
            in_specs=in_specs, out_specs=out_specs,
            scratch_shapes=scratch),
        compiler_params=pltpu.CompilerParams(
            dimension_semantics=("parallel",),
            vmem_limit_bytes=48 * 1024 * 1024),
    )(*inputs)


# ------------------------------ model forward --------------------------------
def dna_embedding_mamba_forward(params, input_ids):
    """Mamba backbone forward; returns (hidden_states, None) like the module."""
    # TODO(synk): embed_dropout / resid_dropout and inference_params state
    # caching from the original module are inference no-ops and not implemented.
    hidden = params["embed"][input_ids]            # embedding lookup (plain-JAX glue)
    resid = jnp.zeros_like(hidden)                 # first Block: residual None -> 0
    layers = params["layers"]
    n_layer = len(layers)
    for i, lp in enumerate(layers):
        if i == n_layer - 1:
            hidden = mamba_block_call(hidden, resid, lp, params["dims"],
                                      final_norm_w=params["norm_f_w"])
        else:
            hidden, resid = mamba_block_call(hidden, resid, lp, params["dims"])
    return hidden, None


# ---------------------------- deterministic params ---------------------------
def init_params(key, *, d_model, n_layer, vocab_size, d_state=16, d_conv=4,
                expand=2, pad_vocab_size_multiple=8):
    if vocab_size % pad_vocab_size_multiple != 0:
        vocab_size += pad_vocab_size_multiple - vocab_size % pad_vocab_size_multiple
    d_inner = expand * d_model
    dt_rank = math.ceil(d_model / 16)
    keys = jax.random.split(key, 2 + n_layer)
    params = {"dims": (d_inner, d_state, dt_rank, d_conv)}
    params["embed"] = 0.02 * jax.random.normal(
        keys[0], (vocab_size, d_model), jnp.float32)
    params["norm_f_w"] = jnp.ones((1, d_model), jnp.float32)
    # A laid out transposed: (d_state, d_inner), d_inner on the lane axis.
    A_T = jnp.tile(jnp.arange(1, d_state + 1, dtype=jnp.float32)[:, None],
                   (1, d_inner))
    layers = []
    for i in range(n_layer):
        lk = jax.random.split(keys[2 + i], 7)
        layers.append(dict(
            norm_w=jnp.ones((1, d_model), jnp.float32),
            in_proj=(0.02 * jax.random.normal(
                lk[0], (d_model, 2 * d_inner), jnp.float32)).astype(jnp.bfloat16),
            conv_w=0.1 * jax.random.normal(lk[1], (d_conv, d_inner), jnp.float32),
            conv_b=0.1 * jax.random.normal(lk[2], (1, d_inner), jnp.float32),
            x_proj=(0.02 * jax.random.normal(
                lk[3], (d_inner, dt_rank + 2 * d_state), jnp.float32)).astype(jnp.bfloat16),
            dt_w=0.1 * jax.random.normal(lk[4], (dt_rank, d_inner), jnp.float32),
            dt_b=0.1 * jax.random.normal(lk[5], (1, d_inner), jnp.float32),
            A_logT=jnp.log(A_T),
            D=jnp.ones((1, d_inner), jnp.float32),
            out_proj=(0.02 * jax.random.normal(
                lk[6], (d_inner, d_model), jnp.float32)).astype(jnp.bfloat16),
        ))
    params["layers"] = layers
    return params, vocab_size


# ------------------------------ pure-JAX reference ---------------------------
def _mm_bf16(x, w_bf16):
    """bf16 matmul with f32 accumulation, matching the kernel's MXU usage."""
    return jax.lax.dot_general(
        x.astype(jnp.bfloat16), w_bf16,
        dimension_numbers=(((x.ndim - 1,), (0,)), ((), ())),
        preferred_element_type=jnp.float32)


def reference_forward(params, input_ids):
    d_inner, d_state, dt_rank, d_conv = params["dims"]
    hidden = params["embed"][input_ids]
    resid = jnp.zeros_like(hidden)
    for p in params["layers"]:
        resid = hidden + resid
        xn = _rmsnorm(resid, p["norm_w"])
        xz = _mm_bf16(xn, p["in_proj"])
        x, z = xz[..., :d_inner], xz[..., d_inner:]
        B, L, _ = x.shape
        xp = jnp.pad(x, ((0, 0), (d_conv - 1, 0), (0, 0)))
        acc = sum(xp[:, k:k + L, :] * p["conv_w"][k][None, None, :]
                  for k in range(d_conv)) + p["conv_b"][None]
        xc = _silu(acc)
        x_dbl = _mm_bf16(xc, p["x_proj"])
        dt = x_dbl[..., :dt_rank]
        Bm = x_dbl[..., dt_rank:dt_rank + d_state]
        Cm = x_dbl[..., dt_rank + d_state:]
        delta = _softplus(jax.lax.dot_general(
            dt, p["dt_w"], (((2,), (0,)), ((), ())),
            preferred_element_type=jnp.float32) + p["dt_b"][None])
        A_T = -jnp.exp(p["A_logT"])                                   # (d_state, d_inner)
        dA = jnp.exp(delta[:, :, None, :] * A_T[None, None])          # (B,L,d_state,d_inner)
        dBx = Bm[..., :, None] * (delta * xc)[:, :, None, :]          # (B,L,d_state,d_inner)

        def step(h, inp):
            dA_t, dBx_t, C_t = inp
            h = dA_t * h + dBx_t                                      # (B,d_state,d_inner)
            y = jnp.sum(h * C_t[:, :, None], axis=1)                  # (B,d_inner)
            return h, y

        h0 = jnp.zeros((B, d_state, d_inner), jnp.float32)
        _, ys = jax.lax.scan(step, h0, (dA.transpose(1, 0, 2, 3),
                                        dBx.transpose(1, 0, 2, 3),
                                        Cm.transpose(1, 0, 2)))
        y = ys.transpose(1, 0, 2) + p["D"][None] * xc
        y = y * _silu(z)
        hidden = _mm_bf16(y, p["out_proj"])
    resid = hidden + resid
    return _rmsnorm(resid, params["norm_f_w"])


# ------------------------------------ main ------------------------------------
if __name__ == "__main__":
    key = jax.random.PRNGKey(0)
    B, L, d_model, n_layer, vocab = 2, 8, 32, 2, 12
    pkey, ikey = jax.random.split(key)
    params, vocab_padded = init_params(pkey, d_model=d_model, n_layer=n_layer,
                                       vocab_size=vocab)
    input_ids = jax.random.randint(ikey, (B, L), 0, vocab, dtype=jnp.int32)

    hidden, _ = dna_embedding_mamba_forward(params, input_ids)
    hidden = jax.block_until_ready(hidden)

    ref = reference_forward(params, input_ids)
    assert hidden.shape == (B, L, d_model)
    max_err = float(jnp.max(jnp.abs(hidden - ref)))
    assert max_err < 2e-3, f"mismatch vs reference: max_err={max_err}"
    print("KERNEL_OK")
</pallas_src>

<mosaic_0001>
module attributes {stable_mosaic.version = 11 : i64} {
  func.func @mamba_block_kernel(%arg0: i32, %arg1: memref<1x8x32xf32, #tpu.memory_space<vmem>>, %arg2: memref<1x8x32xf32, #tpu.memory_space<vmem>>, %arg3: memref<1x32xf32, #tpu.memory_space<vmem>>, %arg4: memref<32x128xbf16, #tpu.memory_space<vmem>>, %arg5: memref<4x64xf32, #tpu.memory_space<vmem>>, %arg6: memref<1x64xf32, #tpu.memory_space<vmem>>, %arg7: memref<64x34xbf16, #tpu.memory_space<vmem>>, %arg8: memref<2x64xf32, #tpu.memory_space<vmem>>, %arg9: memref<1x64xf32, #tpu.memory_space<vmem>>, %arg10: memref<16x64xf32, #tpu.memory_space<vmem>>, %arg11: memref<1x64xf32, #tpu.memory_space<vmem>>, %arg12: memref<64x32xbf16, #tpu.memory_space<vmem>>, %arg13: memref<1x8x32xf32, #tpu.memory_space<vmem>>, %arg14: memref<1x8x32xf32, #tpu.memory_space<vmem>>, %arg15: memref<8x64xf32, #tpu.memory_space<vmem>>, %arg16: memref<8x64xf32, #tpu.memory_space<vmem>>, %arg17: memref<8x16xf32, #tpu.memory_space<vmem>>, %arg18: memref<8x16xf32, #tpu.memory_space<vmem>>, %arg19: memref<8x64xf32, #tpu.memory_space<vmem>>, %arg20: memref<16x64xf32, #tpu.memory_space<vmem>>) attributes {dimension_semantics = [#tpu.dimension_semantics<parallel>], iteration_bounds = array<i64: 2>, scalar_prefetch = 0 : i64, scratch_operands = 6 : i64, tpu.core_type = #tpu.core_type<tc>, window_params = [{transform_indices = @transform_0, window_bounds = array<i64: 1, 8, 32>}, {transform_indices = @transform_1, window_bounds = array<i64: 1, 8, 32>}, {pipeline_mode = #tpu.pipeline_mode<synchronous>, transform_indices = @transform_2, window_bounds = array<i64: 1, 32>}, {pipeline_mode = #tpu.pipeline_mode<synchronous>, transform_indices = @transform_3, window_bounds = array<i64: 32, 128>}, {pipeline_mode = #tpu.pipeline_mode<synchronous>, transform_indices = @transform_4, window_bounds = array<i64: 4, 64>}, {pipeline_mode = #tpu.pipeline_mode<synchronous>, transform_indices = @transform_5, window_bounds = array<i64: 1, 64>}, {pipeline_mode = #tpu.pipeline_mode<synchronous>, transform_indices = @transform_6, window_bounds = array<i64: 64, 34>}, {pipeline_mode = #tpu.pipeline_mode<synchronous>, transform_indices = @transform_7, window_bounds = array<i64: 2, 64>}, {pipeline_mode = #tpu.pipeline_mode<synchronous>, transform_indices = @transform_8, window_bounds = array<i64: 1, 64>}, {pipeline_mode = #tpu.pipeline_mode<synchronous>, transform_indices = @transform_9, window_bounds = array<i64: 16, 64>}, {pipeline_mode = #tpu.pipeline_mode<synchronous>, transform_indices = @transform_10, window_bounds = array<i64: 1, 64>}, {pipeline_mode = #tpu.pipeline_mode<synchronous>, transform_indices = @transform_11, window_bounds = array<i64: 64, 32>}, {transform_indices = @transform_12, window_bounds = array<i64: 1, 8, 32>}, {transform_indices = @transform_13, window_bounds = array<i64: 1, 8, 32>}]} {
    %c0 = arith.constant 0 : index
    %c0_0 = arith.constant 0 : index
    %c0_1 = arith.constant 0 : index
    %0 = vector.load %arg1[%c0, %c0_0, %c0_1] : memref<1x8x32xf32, #tpu.memory_space<vmem>>, vector<1x8x32xf32>
    %1 = vector.shape_cast %0 : vector<1x8x32xf32> to vector<8x32xf32>
    %c0_2 = arith.constant 0 : index
    %c0_3 = arith.constant 0 : index
    %c0_4 = arith.constant 0 : index
    %2 = vector.load %arg2[%c0_2, %c0_3, %c0_4] : memref<1x8x32xf32, #tpu.memory_space<vmem>>, vector<1x8x32xf32>
    %3 = vector.shape_cast %2 : vector<1x8x32xf32> to vector<8x32xf32>
    %4 = arith.addf %1, %3 : vector<8x32xf32>
    %c0_5 = arith.constant 0 : index
    %c0_6 = arith.constant 0 : index
    %5 = vector.load %arg3[%c0_5, %c0_6] : memref<1x32xf32, #tpu.memory_space<vmem>>, vector<1x32xf32>
    %6 = arith.mulf %4, %4 : vector<8x32xf32>
    %cst = arith.constant dense<0.000000e+00> : vector<8xf32>
    %7 = vector.multi_reduction <add>, %6, %cst [1] : vector<8x32xf32> to vector<8xf32>
    %8 = vector.shape_cast %7 : vector<8xf32> to vector<8x1xf32>
    %cst_7 = arith.constant 3.200000e+01 : f32
    %9 = vector.broadcast %cst_7 : f32 to vector<8x1xf32>
    %10 = arith.divf %8, %9 : vector<8x1xf32>
    %cst_8 = arith.constant 9.99999974E-6 : f32
    %11 = vector.broadcast %cst_8 : f32 to vector<8x1xf32>
    %12 = arith.addf %10, %11 : vector<8x1xf32>
    %13 = math.rsqrt %12 : vector<8x1xf32>
    %14 = vector.broadcast %13 : vector<8x1xf32> to vector<8x32xf32>
    %15 = arith.mulf %4, %14 : vector<8x32xf32>
    %16 = vector.broadcast %5 : vector<1x32xf32> to vector<8x32xf32>
    %17 = arith.mulf %15, %16 : vector<8x32xf32>
    %18 = arith.truncf %17 : vector<8x32xf32> to vector<8x32xbf16>
    %c0_9 = arith.constant 0 : index
    %c0_10 = arith.constant 0 : index
    %19 = vector.load %arg4[%c0_9, %c0_10] : memref<32x128xbf16, #tpu.memory_space<vmem>>, vector<32x128xbf16>
    %cst_11 = arith.constant dense<0.000000e+00> : vector<8x128xf32>
    %20 = tpu.matmul %18, %19, %cst_11 {dimension_numbers = #tpu.dot_dimension_numbers<[1], [0], [0], [1], [0, 0, 1, 1], [], []>} : vector<8x32xbf16>, vector<32x128xbf16>, vector<8x128xf32> -> vector<8x128xf32>
    %21 = vector.extract_strided_slice %20 {offsets = [0, 0], sizes = [8, 64], strides = [1, 1]} : vector<8x128xf32> to vector<8x64xf32>
    %22 = vector.extract_strided_slice %20 {offsets = [0, 64], sizes = [8, 64], strides = [1, 1]} : vector<8x128xf32> to vector<8x64xf32>
    %c0_12 = arith.constant 0 : index
    %c0_13 = arith.constant 0 : index
    %23 = vector.load %arg5[%c0_12, %c0_13] : memref<4x64xf32, #tpu.memory_space<vmem>>, vector<4x64xf32>
    %24 = tpu.iota {dimensions = array<i32: 0>} : vector<8x1xi32>
    %25 = vector.extract_strided_slice %23 {offsets = [3, 0], sizes = [1, 64], strides = [1, 1]} : vector<4x64xf32> to vector<1x64xf32>
    %26 = vector.broadcast %25 : vector<1x64xf32> to vector<8x64xf32>
    %27 = arith.mulf %21, %26 : vector<8x64xf32>
    %c3_i32 = arith.constant 3 : i32
    %28 = vector.broadcast %c3_i32 : i32 to vector<8x1xi32>
    %29 = arith.cmpi sge, %24, %28 : vector<8x1xi32>
    %c3_i32_14 = arith.constant 3 : i32
    %30 = tpu.dynamic_rotate %21 by %c3_i32_14 dim 0 : vector<8x64xf32>, i32 -> vector<8x64xf32>
    %cst_15 = arith.constant 0.000000e+00 : f32
    %31 = vector.shape_cast %29 : vector<8x1xi1> to vector<8x1xi1>
    %32 = vector.broadcast %31 : vector<8x1xi1> to vector<8x64xi1>
    %33 = vector.broadcast %cst_15 : f32 to vector<8x64xf32>
    %34 = arith.select %32, %30, %33 : vector<8x64xi1>, vector<8x64xf32>
    %35 = vector.extract_strided_slice %23 {offsets = [0, 0], sizes = [1, 64], strides = [1, 1]} : vector<4x64xf32> to vector<1x64xf32>
    %36 = vector.broadcast %35 : vector<1x64xf32> to vector<8x64xf32>
    %37 = arith.mulf %34, %36 : vector<8x64xf32>
    %38 = arith.addf %27, %37 : vector<8x64xf32>
    %c2_i32 = arith.constant 2 : i32
    %39 = vector.broadcast %c2_i32 : i32 to vector<8x1xi32>
    %40 = arith.cmpi sge, %24, %39 : vector<8x1xi32>
    %c2_i32_16 = arith.constant 2 : i32
    %41 = tpu.dynamic_rotate %21 by %c2_i32_16 dim 0 : vector<8x64xf32>, i32 -> vector<8x64xf32>
    %cst_17 = arith.constant 0.000000e+00 : f32
    %42 = vector.shape_cast %40 : vector<8x1xi1> to vector<8x1xi1>
    %43 = vector.broadcast %42 : vector<8x1xi1> to vector<8x64xi1>
    %44 = vector.broadcast %cst_17 : f32 to vector<8x64xf32>
    %45 = arith.select %43, %41, %44 : vector<8x64xi1>, vector<8x64xf32>
    %46 = vector.extract_strided_slice %23 {offsets = [1, 0], sizes = [1, 64], strides = [1, 1]} : vector<4x64xf32> to vector<1x64xf32>
    %47 = vector.broadcast %46 : vector<1x64xf32> to vector<8x64xf32>
    %48 = arith.mulf %45, %47 : vector<8x64xf32>
    %49 = arith.addf %38, %48 : vector<8x64xf32>
    %c1_i32 = arith.constant 1 : i32
    %50 = vector.broadcast %c1_i32 : i32 to vector<8x1xi32>
    %51 = arith.cmpi sge, %24, %50 : vector<8x1xi32>
    %c1_i32_18 = arith.constant 1 : i32
    %52 = tpu.dynamic_rotate %21 by %c1_i32_18 dim 0 : vector<8x64xf32>, i32 -> vector<8x64xf32>
    %cst_19 = arith.constant 0.000000e+00 : f32
    %53 = vector.shape_cast %51 : vector<8x1xi1> to vector<8x1xi1>
    %54 = vector.broadcast %53 : vector<8x1xi1> to vector<8x64xi1>
    %55 = vector.broadcast %cst_19 : f32 to vector<8x64xf32>
    %56 = arith.select %54, %52, %55 : vector<8x64xi1>, vector<8x64xf32>
    %57 = vector.extract_strided_slice %23 {offsets = [2, 0], sizes = [1, 64], strides = [1, 1]} : vector<4x64xf32> to vector<1x64xf32>
    %58 = vector.broadcast %57 : vector<1x64xf32> to vector<8x64xf32>
    %59 = arith.mulf %56, %58 : vector<8x64xf32>
    %60 = arith.addf %49, %59 : vector<8x64xf32>
    %c0_20 = arith.constant 0 : index
    %c0_21 = arith.constant 0 : index
    %61 = vector.load %arg6[%c0_20, %c0_21] : memref<1x64xf32, #tpu.memory_space<vmem>>, vector<1x64xf32>
    %62 = vector.broadcast %61 : vector<1x64xf32> to vector<8x64xf32>
    %63 = arith.addf %60, %62 : vector<8x64xf32>
    %cst_22 = arith.constant 0.000000e+00 : f32
    %64 = vector.broadcast %cst_22 : f32 to vector<8x64xf32>
    %65 = arith.subf %64, %63 : vector<8x64xf32>
    %66 = math.exp %65 : vector<8x64xf32>
    %cst_23 = arith.constant 1.000000e+00 : f32
    %67 = vector.broadcast %cst_23 : f32 to vector<8x64xf32>
    %68 = arith.addf %67, %66 : vector<8x64xf32>
    %cst_24 = arith.constant 1.000000e+00 : f32
    %69 = vector.broadcast %cst_24 : f32 to vector<8x64xf32>
    %70 = arith.divf %69, %68 : vector<8x64xf32>
    %71 = arith.mulf %63, %70 : vector<8x64xf32>
    %72 = arith.truncf %71 : vector<8x64xf32> to vector<8x64xbf16>
    %c0_25 = arith.constant 0 : index
    %c0_26 = arith.constant 0 : index
    %73 = vector.load %arg7[%c0_25, %c0_26] : memref<64x34xbf16, #tpu.memory_space<vmem>>, vector<64x34xbf16>
    %cst_27 = arith.constant dense<0.000000e+00> : vector<8x34xf32>
    %74 = tpu.matmul %72, %73, %cst_27 {dimension_numbers = #tpu.dot_dimension_numbers<[1], [0], [0], [1], [0, 0, 1, 1], [], []>} : vector<8x64xbf16>, vector<64x34xbf16>, vector<8x34xf32> -> vector<8x34xf32>
    %75 = vector.extract_strided_slice %74 {offsets = [0, 0], sizes = [8, 2], strides = [1, 1]} : vector<8x34xf32> to vector<8x2xf32>
    %c0_28 = arith.constant 0 : index
    %c0_29 = arith.constant 0 : index
    %76 = vector.load %arg8[%c0_28, %c0_29] : memref<2x64xf32, #tpu.memory_space<vmem>>, vector<2x64xf32>
    %cst_30 = arith.constant dense<0.000000e+00> : vector<8x64xf32>
    %77 = tpu.matmul %75, %76, %cst_30 {dimension_numbers = #tpu.dot_dimension_numbers<[1], [0], [0], [1], [0, 0, 1, 1], [], []>} : vector<8x2xf32>, vector<2x64xf32>, vector<8x64xf32> -> vector<8x64xf32>
    %c0_31 = arith.constant 0 : index
    %c0_32 = arith.constant 0 : index
    %78 = vector.load %arg9[%c0_31, %c0_32] : memref<1x64xf32, #tpu.memory_space<vmem>>, vector<1x64xf32>
    %79 = vector.broadcast %78 : vector<1x64xf32> to vector<8x64xf32>
    %80 = arith.addf %77, %79 : vector<8x64xf32>
    %cst_33 = arith.constant 0.000000e+00 : f32
    %81 = vector.broadcast %cst_33 : f32 to vector<8x64xf32>
    %82 = arith.maximumf %80, %81 : vector<8x64xf32>
    %83 = math.absf %80 : vector<8x64xf32>
    %cst_34 = arith.constant 0.000000e+00 : f32
    %84 = vector.broadcast %cst_34 : f32 to vector<8x64xf32>
    %85 = arith.subf %84, %83 : vector<8x64xf32>
    %86 = math.exp %85 : vector<8x64xf32>
    %87 = math.log1p %86 : vector<8x64xf32>
    %88 = arith.addf %82, %87 : vector<8x64xf32>
    %c0_35 = arith.constant 0 : index
    %c0_36 = arith.constant 0 : index
    %89 = vector.load %arg15[%c0_35, %c0_36] : memref<8x64xf32, #tpu.memory_space<vmem>>, vector<8x64xf32>
    tpu.vector_store %arg15[%c0_35, %c0_36], %88 {strides = array<i32>} : memref<8x64xf32, #tpu.memory_space<vmem>>, vector<8x64xf32>,
    %c0_37 = arith.constant 0 : index
    %c0_38 = arith.constant 0 : index
    %90 = vector.load %arg16[%c0_37, %c0_38] : memref<8x64xf32, #tpu.memory_space<vmem>>, vector<8x64xf32>
    tpu.vector_store %arg16[%c0_37, %c0_38], %71 {strides = array<i32>} : memref<8x64xf32, #tpu.memory_space<vmem>>, vector<8x64xf32>,
    %91 = vector.extract_strided_slice %74 {offsets = [0, 2], sizes = [8, 16], strides = [1, 1]} : vector<8x34xf32> to vector<8x16xf32>
    %c0_39 = arith.constant 0 : index
    %c0_40 = arith.constant 0 : index
    %92 = vector.load %arg17[%c0_39, %c0_40] : memref<8x16xf32, #tpu.memory_space<vmem>>, vector<8x16xf32>
    tpu.vector_store %arg17[%c0_39, %c0_40], %91 {strides = array<i32>} : memref<8x16xf32, #tpu.memory_space<vmem>>, vector<8x16xf32>,
    %93 = vector.extract_strided_slice %74 {offsets = [0, 18], sizes = [8, 16], strides = [1, 1]} : vector<8x34xf32> to vector<8x16xf32>
    %c0_41 = arith.constant 0 : index
    %c0_42 = arith.constant 0 : index
    %94 = vector.load %arg18[%c0_41, %c0_42] : memref<8x16xf32, #tpu.memory_space<vmem>>, vector<8x16xf32>
    tpu.vector_store %arg18[%c0_41, %c0_42], %93 {strides = array<i32>} : memref<8x16xf32, #tpu.memory_space<vmem>>, vector<8x16xf32>,
    %c0_43 = arith.constant 0 : index
    %c0_44 = arith.constant 0 : index
    %95 = vector.load %arg10[%c0_43, %c0_44] : memref<16x64xf32, #tpu.memory_space<vmem>>, vector<16x64xf32>
    %96 = math.exp %95 : vector<16x64xf32>
    %cst_45 = arith.constant 0.000000e+00 : f32
    %97 = vector.broadcast %cst_45 : f32 to vector<16x64xf32>
    %98 = arith.subf %97, %96 : vector<16x64xf32>
    %c0_46 = arith.constant 0 : index
    %c0_47 = arith.constant 0 : index
    %99 = vector.load %arg11[%c0_46, %c0_47] : memref<1x64xf32, #tpu.memory_space<vmem>>, vector<1x64xf32>
    %cst_48 = arith.constant 0.000000e+00 : f32
    %100 = vector.broadcast %cst_48 : f32 to vector<16x64xf32>
    %c0_49 = arith.constant 0 : index
    %c0_50 = arith.constant 0 : index
    %101 = vector.load %arg20[%c0_49, %c0_50] : memref<16x64xf32, #tpu.memory_space<vmem>>, vector<16x64xf32>
    tpu.vector_store %arg20[%c0_49, %c0_50], %100 {strides = array<i32>} : memref<16x64xf32, #tpu.memory_space<vmem>>, vector<16x64xf32>,
    %c0_i32 = arith.constant 0 : i32
    %c1_i32_51 = arith.constant 1 : i32
    %102 = arith.muli %c0_i32, %c1_i32_51 : i32
    %c0_i32_52 = arith.constant 0 : i32
    %103 = arith.addi %c0_i32_52, %102 : i32
    %c8_i32 = arith.constant 8 : i32
    %104 = arith.muli %103, %c8_i32 : i32
    %105 = tpu.assume_multiple %104, 8 : i32
    %106 = arith.index_cast %105 : i32 to index
    %c0_53 = arith.constant 0 : index
    %107 = vector.load %arg15[%106, %c0_53] : memref<8x64xf32, #tpu.memory_space<vmem>>, vector<8x64xf32>
    %108 = arith.index_cast %105 : i32 to index
    %c0_54 = arith.constant 0 : index
    %109 = vector.load %arg16[%108, %c0_54] : memref<8x64xf32, #tpu.memory_space<vmem>>, vector<8x64xf32>
    %110 = arith.index_cast %105 : i32 to index
    %c0_55 = arith.constant 0 : index
    %111 = vector.load %arg17[%110, %c0_55] : memref<8x16xf32, #tpu.memory_space<vmem>>, vector<8x16xf32>
    %112 = arith.index_cast %105 : i32 to index
    %c0_56 = arith.constant 0 : index
    %113 = vector.load %arg18[%112, %c0_56] : memref<8x16xf32, #tpu.memory_space<vmem>>, vector<8x16xf32>
    %114 = vector.shape_cast %107 : vector<8x64xf32> to vector<8x1x64xf32>
    %115 = vector.shape_cast %98 : vector<16x64xf32> to vector<1x16x64xf32>
    %116 = vector.broadcast %114 : vector<8x1x64xf32> to vector<8x16x64xf32>
    %117 = vector.broadcast %115 : vector<1x16x64xf32> to vector<8x16x64xf32>
    %118 = arith.mulf %116, %117 : vector<8x16x64xf32>
    %119 = math.exp %118 : vector<8x16x64xf32>
    %120 = vector.shape_cast %111 : vector<8x16xf32> to vector<8x16x1xf32>
    %121 = arith.mulf %107, %109 : vector<8x64xf32>
    %122 = vector.shape_cast %121 : vector<8x64xf32> to vector<8x1x64xf32>
    %123 = vector.broadcast %120 : vector<8x16x1xf32> to vector<8x16x64xf32>
    %124 = vector.broadcast %122 : vector<8x1x64xf32> to vector<8x16x64xf32>
    %125 = arith.mulf %123, %124 : vector<8x16x64xf32>
    %126 = vector.shape_cast %113 : vector<8x16xf32> to vector<8x16x1xf32>
    %c0_57 = arith.constant 0 : index
    %c0_58 = arith.constant 0 : index
    %127 = vector.load %arg20[%c0_57, %c0_58] : memref<16x64xf32, #tpu.memory_space<vmem>>, vector<16x64xf32>
    %128 = vector.extract_strided_slice %119 {offsets = [0, 0, 0], sizes = [1, 16, 64], strides = [1, 1, 1]} : vector<8x16x64xf32> to vector<1x16x64xf32>
    %129 = vector.shape_cast %128 : vector<1x16x64xf32> to vector<16x64xf32>
    %130 = arith.mulf %129, %127 : vector<16x64xf32>
    %131 = vector.extract_strided_slice %125 {offsets = [0, 0, 0], sizes = [1, 16, 64], strides = [1, 1, 1]} : vector<8x16x64xf32> to vector<1x16x64xf32>
    %132 = vector.shape_cast %131 : vector<1x16x64xf32> to vector<16x64xf32>
    %133 = arith.addf %130, %132 : vector<16x64xf32>
    %134 = vector.extract_strided_slice %126 {offsets = [0, 0, 0], sizes = [1, 16, 1], strides = [1, 1, 1]} : vector<8x16x1xf32> to vector<1x16x1xf32>
    %135 = vector.shape_cast %134 : vector<1x16x1xf32> to vector<16x1xf32>
    %136 = vector.broadcast %135 : vector<16x1xf32> to vector<16x64xf32>
    %137 = arith.mulf %133, %136 : vector<16x64xf32>
    %cst_59 = arith.constant dense<0.000000e+00> : vector<64xf32>
    %138 = vector.multi_reduction <add>, %137, %cst_59 [0] : vector<16x64xf32> to vector<64xf32>
    %139 = vector.shape_cast %138 : vector<64xf32> to vector<1x64xf32>
    %140 = vector.extract_strided_slice %119 {offsets = [1, 0, 0], sizes = [1, 16, 64], strides = [1, 1, 1]} : vector<8x16x64xf32> to vector<1x16x64xf32>
    %141 = vector.shape_cast %140 : vector<1x16x64xf32> to vector<16x64xf32>
    %142 = arith.mulf %141, %133 : vector<16x64xf32>
    %143 = vector.extract_strided_slice %125 {offsets = [1, 0, 0], sizes = [1, 16, 64], strides = [1, 1, 1]} : vector<8x16x64xf32> to vector<1x16x64xf32>
    %144 = vector.shape_cast %143 : vector<1x16x64xf32> to vector<16x64xf32>
    %145 = arith.addf %142, %144 : vector<16x64xf32>
    %146 = vector.extract_strided_slice %126 {offsets = [1, 0, 0], sizes = [1, 16, 1], strides = [1, 1, 1]} : vector<8x16x1xf32> to vector<1x16x1xf32>
    %147 = vector.shape_cast %146 : vector<1x16x1xf32> to vector<16x1xf32>
    %148 = vector.broadcast %147 : vector<16x1xf32> to vector<16x64xf32>
    %149 = arith.mulf %145, %148 : vector<16x64xf32>
    %cst_60 = arith.constant dense<0.000000e+00> : vector<64xf32>
    %150 = vector.multi_reduction <add>, %149, %cst_60 [0] : vector<16x64xf32> to vector<64xf32>
    %151 = vector.shape_cast %150 : vector<64xf32> to vector<1x64xf32>
    %152 = vector.extract_strided_slice %119 {offsets = [2, 0, 0], sizes = [1, 16, 64], strides = [1, 1, 1]} : vector<8x16x64xf32> to vector<1x16x64xf32>
    %153 = vector.shape_cast %152 : vector<1x16x64xf32> to vector<16x64xf32>
    %154 = arith.mulf %153, %145 : vector<16x64xf32>
    %155 = vector.extract_strided_slice %125 {offsets = [2, 0, 0], sizes = [1, 16, 64], strides = [1, 1, 1]} : vector<8x16x64xf32> to vector<1x16x64xf32>
    %156 = vector.shape_cast %155 : vector<1x16x64xf32> to vector<16x64xf32>
    %157 = arith.addf %154, %156 : vector<16x64xf32>
    %158 = vector.extract_strided_slice %126 {offsets = [2, 0, 0], sizes = [1, 16, 1], strides = [1, 1, 1]} : vector<8x16x1xf32> to vector<1x16x1xf32>
    %159 = vector.shape_cast %158 : vector<1x16x1xf32> to vector<16x1xf32>
    %160 = vector.broadcast %159 : vector<16x1xf32> to vector<16x64xf32>
    %161 = arith.mulf %157, %160 : vector<16x64xf32>
    %cst_61 = arith.constant dense<0.000000e+00> : vector<64xf32>
    %162 = vector.multi_reduction <add>, %161, %cst_61 [0] : vector<16x64xf32> to vector<64xf32>
    %163 = vector.shape_cast %162 : vector<64xf32> to vector<1x64xf32>
    %164 = vector.extract_strided_slice %119 {offsets = [3, 0, 0], sizes = [1, 16, 64], strides = [1, 1, 1]} : vector<8x16x64xf32> to vector<1x16x64xf32>
    %165 = vector.shape_cast %164 : vector<1x16x64xf32> to vector<16x64xf32>
    %166 = arith.mulf %165, %157 : vector<16x64xf32>
    %167 = vector.extract_strided_slice %125 {offsets = [3, 0, 0], sizes = [1, 16, 64], strides = [1, 1, 1]} : vector<8x16x64xf32> to vector<1x16x64xf32>
    %168 = vector.shape_cast %167 : vector<1x16x64xf32> to vector<16x64xf32>
    %169 = arith.addf %166, %168 : vector<16x64xf32>
    %170 = vector.extract_strided_slice %126 {offsets = [3, 0, 0], sizes = [1, 16, 1], strides = [1, 1, 1]} : vector<8x16x1xf32> to vector<1x16x1xf32>
    %171 = vector.shape_cast %170 : vector<1x16x1xf32> to vector<16x1xf32>
    %172 = vector.broadcast %171 : vector<16x1xf32> to vector<16x64xf32>
    %173 = arith.mulf %169, %172 : vector<16x64xf32>
    %cst_62 = arith.constant dense<0.000000e+00> : vector<64xf32>
    %174 = vector.multi_reduction <add>, %173, %cst_62 [0] : vector<16x64xf32> to vector<64xf32>
    %175 = vector.shape_cast %174 : vector<64xf32> to vector<1x64xf32>
    %176 = vector.extract_strided_slice %119 {offsets = [4, 0, 0], sizes = [1, 16, 64], strides = [1, 1, 1]} : vector<8x16x64xf32> to vector<1x16x64xf32>
    %177 = vector.shape_cast %176 : vector<1x16x64xf32> to vector<16x64xf32>
    %178 = arith.mulf %177, %169 : vector<16x64xf32>
    %179 = vector.extract_strided_slice %125 {offsets = [4, 0, 0], sizes = [1, 16, 64], strides = [1, 1, 1]} : vector<8x16x64xf32> to vector<1x16x64xf32>
    %180 = vector.shape_cast %179 : vector<1x16x64xf32> to vector<16x64xf32>
    %181 = arith.addf %178, %180 : vector<16x64xf32>
    %182 = vector.extract_strided_slice %126 {offsets = [4, 0, 0], sizes = [1, 16, 1], strides = [1, 1, 1]} : vector<8x16x1xf32> to vector<1x16x1xf32>
    %183 = vector.shape_cast %182 : vector<1x16x1xf32> to vector<16x1xf32>
    %184 = vector.broadcast %183 : vector<16x1xf32> to vector<16x64xf32>
    %185 = arith.mulf %181, %184 : vector<16x64xf32>
    %cst_63 = arith.constant dense<0.000000e+00> : vector<64xf32>
    %186 = vector.multi_reduction <add>, %185, %cst_63 [0] : vector<16x64xf32> to vector<64xf32>
    %187 = vector.shape_cast %186 : vector<64xf32> to vector<1x64xf32>
    %188 = vector.extract_strided_slice %119 {offsets = [5, 0, 0], sizes = [1, 16, 64], strides = [1, 1, 1]} : vector<8x16x64xf32> to vector<1x16x64xf32>
    %189 = vector.shape_cast %188 : vector<1x16x64xf32> to vector<16x64xf32>
    %190 = arith.mulf %189, %181 : vector<16x64xf32>
    %191 = vector.extract_strided_slice %125 {offsets = [5, 0, 0], sizes = [1, 16, 64], strides = [1, 1, 1]} : vector<8x16x64xf32> to vector<1x16x64xf32>
    %192 = vector.shape_cast %191 : vector<1x16x64xf32> to vector<16x64xf32>
    %193 = arith.addf %190, %192 : vector<16x64xf32>
    %194 = vector.extract_strided_slice %126 {offsets = [5, 0, 0], sizes = [1, 16, 1], strides = [1, 1, 1]} : vector<8x16x1xf32> to vector<1x16x1xf32>
    %195 = vector.shape_cast %194 : vector<1x16x1xf32> to vector<16x1xf32>
    %196 = vector.broadcast %195 : vector<16x1xf32> to vector<16x64xf32>
    %197 = arith.mulf %193, %196 : vector<16x64xf32>
    %cst_64 = arith.constant dense<0.000000e+00> : vector<64xf32>
    %198 = vector.multi_reduction <add>, %197, %cst_64 [0] : vector<16x64xf32> to vector<64xf32>
    %199 = vector.shape_cast %198 : vector<64xf32> to vector<1x64xf32>
    %200 = vector.extract_strided_slice %119 {offsets = [6, 0, 0], sizes = [1, 16, 64], strides = [1, 1, 1]} : vector<8x16x64xf32> to vector<1x16x64xf32>
    %201 = vector.shape_cast %200 : vector<1x16x64xf32> to vector<16x64xf32>
    %202 = arith.mulf %201, %193 : vector<16x64xf32>
    %203 = vector.extract_strided_slice %125 {offsets = [6, 0, 0], sizes = [1, 16, 64], strides = [1, 1, 1]} : vector<8x16x64xf32> to vector<1x16x64xf32>
    %204 = vector.shape_cast %203 : vector<1x16x64xf32> to vector<16x64xf32>
    %205 = arith.addf %202, %204 : vector<16x64xf32>
    %206 = vector.extract_strided_slice %126 {offsets = [6, 0, 0], sizes = [1, 16, 1], strides = [1, 1, 1]} : vector<8x16x1xf32> to vector<1x16x1xf32>
    %207 = vector.shape_cast %206 : vector<1x16x1xf32> to vector<16x1xf32>
    %208 = vector.broadcast %207 : vector<16x1xf32> to vector<16x64xf32>
    %209 = arith.mulf %205, %208 : vector<16x64xf32>
    %cst_65 = arith.constant dense<0.000000e+00> : vector<64xf32>
    %210 = vector.multi_reduction <add>, %209, %cst_65 [0] : vector<16x64xf32> to vector<64xf32>
    %211 = vector.shape_cast %210 : vector<64xf32> to vector<1x64xf32>
    %212 = vector.extract_strided_slice %119 {offsets = [7, 0, 0], sizes = [1, 16, 64], strides = [1, 1, 1]} : vector<8x16x64xf32> to vector<1x16x64xf32>
    %213 = vector.shape_cast %212 : vector<1x16x64xf32> to vector<16x64xf32>
    %214 = arith.mulf %213, %205 : vector<16x64xf32>
    %215 = vector.extract_strided_slice %125 {offsets = [7, 0, 0], sizes = [1, 16, 64], strides = [1, 1, 1]} : vector<8x16x64xf32> to vector<1x16x64xf32>
    %216 = vector.shape_cast %215 : vector<1x16x64xf32> to vector<16x64xf32>
    %217 = arith.addf %214, %216 : vector<16x64xf32>
    %218 = vector.extract_strided_slice %126 {offsets = [7, 0, 0], sizes = [1, 16, 1], strides = [1, 1, 1]} : vector<8x16x1xf32> to vector<1x16x1xf32>
    %219 = vector.shape_cast %218 : vector<1x16x1xf32> to vector<16x1xf32>
    %220 = vector.broadcast %219 : vector<16x1xf32> to vector<16x64xf32>
    %221 = arith.mulf %217, %220 : vector<16x64xf32>
    %cst_66 = arith.constant dense<0.000000e+00> : vector<64xf32>
    %222 = vector.multi_reduction <add>, %221, %cst_66 [0] : vector<16x64xf32> to vector<64xf32>
    %223 = vector.shape_cast %222 : vector<64xf32> to vector<1x64xf32>
    %c0_67 = arith.constant 0 : index
    %c0_68 = arith.constant 0 : index
    %224 = vector.load %arg20[%c0_67, %c0_68] : memref<16x64xf32, #tpu.memory_space<vmem>>, vector<16x64xf32>
    tpu.vector_store %arg20[%c0_67, %c0_68], %217 {strides = array<i32>} : memref<16x64xf32, #tpu.memory_space<vmem>>, vector<16x64xf32>,
    %225 = tpu.concatenate %139, %151, %163, %175, %187, %199, %211, %223 in 0 : vector<1x64xf32>, vector<1x64xf32>, vector<1x64xf32>, vector<1x64xf32>, vector<1x64xf32>, vector<1x64xf32>, vector<1x64xf32>, vector<1x64xf32> -> vector<8x64xf32>
    %226 = vector.broadcast %99 : vector<1x64xf32> to vector<8x64xf32>
    %227 = arith.mulf %226, %109 : vector<8x64xf32>
    %228 = arith.addf %225, %227 : vector<8x64xf32>
    %229 = arith.index_cast %105 : i32 to index
    %c0_69 = arith.constant 0 : index
    %230 = vector.load %arg19[%229, %c0_69] : memref<8x64xf32, #tpu.memory_space<vmem>>, vector<8x64xf32>
    tpu.vector_store %arg19[%229, %c0_69], %228 {strides = array<i32>} : memref<8x64xf32, #tpu.memory_space<vmem>>, vector<8x64xf32>,
    %c1_i32_70 = arith.constant 1 : i32
    %c0_71 = arith.constant 0 : index
    %c0_72 = arith.constant 0 : index
    %231 = vector.load %arg19[%c0_71, %c0_72] : memref<8x64xf32, #tpu.memory_space<vmem>>, vector<8x64xf32>
    %cst_73 = arith.constant 0.000000e+00 : f32
    %232 = vector.broadcast %cst_73 : f32 to vector<8x64xf32>
    %233 = arith.subf %232, %22 : vector<8x64xf32>
    %234 = math.exp %233 : vector<8x64xf32>
    %cst_74 = arith.constant 1.000000e+00 : f32
    %235 = vector.broadcast %cst_74 : f32 to vector<8x64xf32>
    %236 = arith.addf %235, %234 : vector<8x64xf32>
    %cst_75 = arith.constant 1.000000e+00 : f32
    %237 = vector.broadcast %cst_75 : f32 to vector<8x64xf32>
    %238 = arith.divf %237, %236 : vector<8x64xf32>
    %239 = arith.mulf %22, %238 : vector<8x64xf32>
    %240 = arith.mulf %231, %239 : vector<8x64xf32>
    %241 = arith.truncf %240 : vector<8x64xf32> to vector<8x64xbf16>
    %c0_76 = arith.constant 0 : index
    %c0_77 = arith.constant 0 : index
    %242 = vector.load %arg12[%c0_76, %c0_77] : memref<64x32xbf16, #tpu.memory_space<vmem>>, vector<64x32xbf16>
    %cst_78 = arith.constant dense<0.000000e+00> : vector<8x32xf32>
    %243 = tpu.matmul %241, %242, %cst_78 {dimension_numbers = #tpu.dot_dimension_numbers<[1], [0], [0], [1], [0, 0, 1, 1], [], []>} : vector<8x64xbf16>, vector<64x32xbf16>, vector<8x32xf32> -> vector<8x32xf32>
    %c0_79 = arith.constant 0 : index
    %c0_80 = arith.constant 0 : index
    %c0_81 = arith.constant 0 : index
    %244 = vector.load %arg14[%c0_79, %c0_80, %c0_81] : memref<1x8x32xf32, #tpu.memory_space<vmem>>, vector<1x8x32xf32>
    %245 = vector.shape_cast %244 : vector<1x8x32xf32> to vector<8x32xf32>
    %246 = vector.shape_cast %4 : vector<8x32xf32> to vector<1x8x32xf32>
    tpu.vector_store %arg14[%c0_79, %c0_80, %c0_81], %246 {strides = array<i32>} : memref<1x8x32xf32, #tpu.memory_space<vmem>>, vector<1x8x32xf32>,
    %c0_82 = arith.constant 0 : index
    %c0_83 = arith.constant 0 : index
    %c0_84 = arith.constant 0 : index
    %247 = vector.load %arg13[%c0_82, %c0_83, %c0_84] : memref<1x8x32xf32, #tpu.memory_space<vmem>>, vector<1x8x32xf32>
    %248 = vector.shape_cast %247 : vector<1x8x32xf32> to vector<8x32xf32>
    %249 = vector.shape_cast %243 : vector<8x32xf32> to vector<1x8x32xf32>
    tpu.vector_store %arg13[%c0_82, %c0_83, %c0_84], %249 {strides = array<i32>} : memref<1x8x32xf32, #tpu.memory_space<vmem>>, vector<1x8x32xf32>,
    return
  }
  func.func @transform_0(%arg0: i32) -> (i32, i32, i32) {
    %c0_i32 = arith.constant 0 : i32
    %c0_i32_0 = arith.constant 0 : i32
    %c0_i32_1 = arith.constant 0 : i32
    return %arg0, %c0_i32, %c0_i32_0 : i32, i32, i32
  }
  func.func @transform_1(%arg0: i32) -> (i32, i32, i32) {
    %c0_i32 = arith.constant 0 : i32
    %c0_i32_0 = arith.constant 0 : i32
    %c0_i32_1 = arith.constant 0 : i32
    return %arg0, %c0_i32, %c0_i32_0 : i32, i32, i32
  }
  func.func @transform_2(%arg0: i32) -> (i32, i32) {
    %c0_i32 = arith.constant 0 : i32
    %c0_i32_0 = arith.constant 0 : i32
    %c0_i32_1 = arith.constant 0 : i32
    return %c0_i32, %c0_i32_0 : i32, i32
  }
  func.func @transform_3(%arg0: i32) -> (i32, i32) {
    %c0_i32 = arith.constant 0 : i32
    %c0_i32_0 = arith.constant 0 : i32
    %c0_i32_1 = arith.constant 0 : i32
    return %c0_i32, %c0_i32_0 : i32, i32
  }
  func.func @transform_4(%arg0: i32) -> (i32, i32) {
    %c0_i32 = arith.constant 0 : i32
    %c0_i32_0 = arith.constant 0 : i32
    %c0_i32_1 = arith.constant 0 : i32
    return %c0_i32, %c0_i32_0 : i32, i32
  }
  func.func @transform_5(%arg0: i32) -> (i32, i32) {
    %c0_i32 = arith.constant 0 : i32
    %c0_i32_0 = arith.constant 0 : i32
    %c0_i32_1 = arith.constant 0 : i32
    return %c0_i32, %c0_i32_0 : i32, i32
  }
  func.func @transform_6(%arg0: i32) -> (i32, i32) {
    %c0_i32 = arith.constant 0 : i32
    %c0_i32_0 = arith.constant 0 : i32
    %c0_i32_1 = arith.constant 0 : i32
    return %c0_i32, %c0_i32_0 : i32, i32
  }
  func.func @transform_7(%arg0: i32) -> (i32, i32) {
    %c0_i32 = arith.constant 0 : i32
    %c0_i32_0 = arith.constant 0 : i32
    %c0_i32_1 = arith.constant 0 : i32
    return %c0_i32, %c0_i32_0 : i32, i32
  }
  func.func @transform_8(%arg0: i32) -> (i32, i32) {
    %c0_i32 = arith.constant 0 : i32
    %c0_i32_0 = arith.constant 0 : i32
    %c0_i32_1 = arith.constant 0 : i32
    return %c0_i32, %c0_i32_0 : i32, i32
  }
  func.func @transform_9(%arg0: i32) -> (i32, i32) {
    %c0_i32 = arith.constant 0 : i32
    %c0_i32_0 = arith.constant 0 : i32
    %c0_i32_1 = arith.constant 0 : i32
    return %c0_i32, %c0_i32_0 : i32, i32
  }
  func.func @transform_10(%arg0: i32) -> (i32, i32) {
    %c0_i32 = arith.constant 0 : i32
    %c0_i32_0 = arith.constant 0 : i32
    %c0_i32_1 = arith.constant 0 : i32
    return %c0_i32, %c0_i32_0 : i32, i32
  }
  func.func @transform_11(%arg0: i32) -> (i32, i32) {
    %c0_i32 = arith.constant 0 : i32
    %c0_i32_0 = arith.constant 0 : i32
    %c0_i32_1 = arith.constant 0 : i32
    return %c0_i32, %c0_i32_0 : i32, i32
  }
  func.func @transform_12(%arg0: i32) -> (i32, i32, i32) {
    %c0_i32 = arith.constant 0 : i32
    %c0_i32_0 = arith.constant 0 : i32
    %c0_i32_1 = arith.constant 0 : i32
    return %arg0, %c0_i32, %c0_i32_0 : i32, i32, i32
  }
  func.func @transform_13(%arg0: i32) -> (i32, i32, i32) {
    %c0_i32 = arith.constant 0 : i32
    %c0_i32_0 = arith.constant 0 : i32
    %c0_i32_1 = arith.constant 0 : i32
    return %arg0, %c0_i32, %c0_i32_0 : i32, i32, i32
  }
}

</mosaic_0001>

<bundles_post_ra>
// kernel: tpu_custom_call.1
= control target key start
LH: loop header
LB: loop body
LE: loop exit
PB: predicated region body
PF: predicated region fallthrough
CT: control target
= control target key end

     0   :  { %s2366_s0 = inlined_call_operand.vmem [shape: f32[2,8,32], index: 0, kind: input, shape index: {}]   ;;  %s2367_s1 = inlined_call_operand.vmem [shape: f32[2,8,32], index: 1, kind: input, shape index: {}]   ;;  %s2368_s2 = inlined_call_operand.vmem [shape: f32[1,32], index: 2, kind: input, shape index: {}]   ;;  %s2369_s3 = inlined_call_operand.vmem [shape: bf16[32,128], index: 3, kind: input, shape index: {}]   ;;  %s2370_s4 = inlined_call_operand.vmem [shape: f32[4,64], index: 4, kind: input, shape index: {}]   ;;  %s2371_s5 = inlined_call_operand.vmem [shape: f32[1,64], index: 5, kind: input, shape index: {}]   ;;  %s2372_s6 = inlined_call_operand.vmem [shape: bf16[64,34], index: 6, kind: input, shape index: {}]   ;;  %s2373_s7 = inlined_call_operand.vmem [shape: f32[2,64], index: 7, kind: input, shape index: {}]   ;;  %s2374_s8 = inlined_call_operand.vmem [shape: f32[1,64], index: 8, kind: input, shape index: {}]   ;;  %s2375_s9 = inlined_call_operand.vmem [shape: f32[16,64], index: 9, kind: input, shape index: {}]   ;;  %s2376_s10 = inlined_call_operand.vmem [shape: f32[1,64], index: 10, kind: input, shape index: {}]   ;;  %s2377_s11 = inlined_call_operand.vmem [shape: bf16[64,32], index: 11, kind: input, shape index: {}]   ;;  %s2378_s12 = inlined_call_operand.hbm [shape: f32[2,8,32], index: 12, kind: output, shape index: {0}]   ;;  %s2379_s13 = inlined_call_operand.hbm [shape: f32[2,8,32], index: 13, kind: output, shape index: {1}]  }
   0x1   :  { %2382 = sst [smem:[#allocation15_spill]] %s2366_s0 }
   0x2   :  { %2383 = sst [smem:[#allocation16_spill]] %s2367_s1 }
   0x3   :  { %2384 = sst [smem:[#allocation17_spill]] %s2368_s2 }
   0x4   :  { %2385 = sst [smem:[#allocation18_spill]] %s2369_s3 }
   0x5   :  { %2386 = sst [smem:[#allocation19_spill]] %s2370_s4 }
   0x6   :  { %19 = vsyncpa [#allocation9], 0 }
   0x7   :  { %21 = vsyncpa [#allocation9 + $0x1], 0 }
   0x8   :  { %22 = vsyncpa [#allocation11], 0 }
   0x9   :  { %24 = vsyncpa [#allocation11 + $0x1], 0  ;;  %s1965_s25 = smov 0   ;;  %s1967_s26 = smov 0  }
   0xa   :  { %s1969_s27 = smov 0   ;;  %s1971_s28 = smov 0  }
   0xb LB: > { %s1986_s29 = sadd.s32 4294967295, %s1885_s28   ;;  %s1599_s30 = sadd.s32 4294967294, %s1885_s28   ;;  %s1885_s28 = sphi %s1971_s28, %s2401_s28   ;;  %s1881_s27 = sphi %s1969_s27, %s2400_s27   ;;  %s1877_s26 = sphi %s1967_s26, %s2399_s26   ;;  %s1873_s25 = sphi %s1965_s25, %s2398_s25  }
   0xc   : > { %s1990_s14 = sadd.s32 1, %s1885_s28   ;;  %s299_s15 = sadd.s32 1, %s1881_s27 }
   0xd   : > { %s296_s16 = ssub.s32 %s1885_s28, %s1990_s14  ;;  %p309_p0 = scmp.ne.s32.totalorder %s1881_s27, %s1877_s26 }
   0xe   : > { %p297_p1 = scmp.eq.s32.totalorder %s296_s16, 0  ;;  %p310_p2 = scmp.eq.s32.totalorder %s1986_s29, 1 }
   0xf   : > { %p315_p3 = scmp.ne.s32.totalorder %s1877_s26, %s1873_s25  ;;  %p316_p4 = scmp.eq.s32.totalorder %s1599_s30, 1 }
  0x10   : > { %s2001_s17 = scalar_select %p297_p1, %s1881_s27, %s299_s15  }
  0x11   : > { %p2003_p5 = por %p310_p2, %p309_p0  ;;  %p2007_p6 = por %p316_p4, %p315_p3 }
  0x12   : > { %2387 = sst [smem:[#allocation14_spill]] %s2001_s17  ;;  %p1602_p7 = scmp.ge.s32.totalorder %s1885_s28, 1 }
  0x13   : > { %p404_p8 = scmp.lt.s32.totalorder %s1885_s28, 3 }
  0x15   : > { %p405_p9 = pnand %p1602_p7, %p404_p8 }
  0x16   : > { %p456_p10 = scmp.lt.s32.totalorder (!%p405_p9), %s1986_s29, 1  ;;  %s2390_s0 = sld [smem:[#allocation15_spill]] (!%p405_p9) }
  0x17   : > { %408 = sbr.rel (%p405_p9) target bundleno = 1191 (0x4a7), region = 68  ;;  %s2391_s1 = sld [smem:[#allocation16_spill]] (!%p405_p9) }
  0x18   : > { %s2392_s3 = sld [smem:[#allocation18_spill]] (!%p405_p9)  ;;  %s1890_s22 = smov (!%p405_p9), 126  }
  0x19   : > { %s2393_s2 = sld [smem:[#allocation17_spill]] (!%p405_p9)  ;;  %s1891_s17 = smov (!%p405_p9), 64  }
  0x1a   : > { %s2394_s4 = sld [smem:[#allocation19_spill]] (!%p405_p9) }
  0x1c   : > { %s457_s20 = scalar_select %p456_p10, %s1986_s29, 1  ;;  %vm470_vm0 = vcmask 261120   ;;  %v1887_v6 = vmov 0.0   ;;  %vm1888_vm1 = vmmov 0   ;;  %v1736_v16 = vld [vmem:[%s2372_s6 + $0x18] sm:$0xff]   ;;  %v1737_v17 = vld [vmem:[%s2372_s6 + $0x10] sm:$0xff]   ;;  %v547_v20 = vlaneseq }
  0x1d   : > { %1647 = vmatprep.subr.bf16.mxu1 %v1887_v6  ;;  %1651 = vmatprep.mubr.msk.bf16.mxu1 %vm1888_vm1, %v1887_v6  ;;  %v1738_v18 = vld [vmem:[%s2372_s6 + $0x8] sm:$0xff]   ;;  %v1739_v19 = vld [vmem:[%s2372_s6] sm:$0xff]   ;;  %vm635_vm2 = vcmask 523264   ;;  %vm691_vm6 = vcmask 1041408   ;;  %vm687_vm7 = vcmask 15360   ;;  %vm785_vm8 = vcmask 130048  }
  0x1e   : > { %s1605_s21 = sshll.u32 %s457_s20, 3  ;;  %v1734_v5 = vld [vmem:[%s2392_s3 + $0x8] sm:$0xff]   ;;  %v1735_v7 = vld [vmem:[%s2392_s3] sm:$0xff]   ;;  %1667 = vmatprep.subr.mxu0 %v1887_v6  ;;  %1669 = vmatprep.mubr.msk.f32.mxu0 %vm1888_vm1, %v1887_v6  ;;  %800 = vst.msk [vmem:[#allocation7] sm:$0xff] %vm635_vm2, %v1887_v6  ;;  %801 = vst.msk [vmem:[#allocation7 + $0x8] sm:$0xff] %vm635_vm2, %v1887_v6  ;;  %v2066_v21 = vshrl.u32 %v547_v20, 7 }
  0x1f   : > { %s459_s24 = scalar_lea.vmem %s2390_s0, %s1605_s21  ;;  %s463_s16 = scalar_lea.vmem %s2391_s1, %s1605_s21  ;;  %1648 = vmatpush3.bf16.msra.mxu1 %v1734_v5  ;;  %v1607_v12 = vld [vmem:[%s2393_s2] ss:$0 sm:$0xff]  ;;  %vm1351_vm10 = vcmask 1040384   ;;  %vm1354_vm11 = vcmask 1042432   ;;  %vm1356_vm12 = vcmask 1043456   ;;  %vm1358_vm13 = vcmask 1044480  }
  0x20   : > { %v465_v0 = vld [vmem:[%s459_s24] sm:$0xff]  ;;  %1649 = vmatprep.subr.bf16.mxu1 %v1887_v6  ;;  %v2069_v22 = vsub.s32 3, %v2066_v21  ;;  %v2075_v24 = vsub.s32 0, %v2066_v21  ;;  %v2078_v25 = vsub.s32 1, %v2066_v21  ;;  %vm554_vm3 = vcmp.ge.s32.totalorder %v2066_v21, 3  ;;  %s1889_s21 = smov 110  }
  0x21   : > { %v466_v1 = vld [vmem:[%s463_s16] sm:$0xff]  ;;  %vm565_vm4 = vcmp.ge.s32.totalorder %v2066_v21, 2  ;;  %v2087_v29 = vsub.s32 2, %v2066_v21  ;;  %vm576_vm5 = vcmp.ge.s32.totalorder %v2066_v21, 1  ;;  %vm1360_vm14 = vcmask 1045504   ;;  %s1893_s1 = smov [#allocation10]  }
  0x22   : > { %v2021_v2 = vadd.f32 %v466_v1, %v465_v0  ;;  %v546_v23 = vld [vmem:[%s2394_s4] sm:$0xf]  ;;  %vm1362_vm15 = vcmask 1046528   ;;  %s1799_s2 = sshll.u32 %s1893_s1, 4  ;;  %s1800_s2 = int_to_ptr.vmem [resolvable:$false] %s1799_s2 }
  0x23   : > { %1650 = vmatpush3.bf16.msra.mxu1 %v1735_v7  ;;  %v552_v26 = vrot.slane %v546_v23, %v2069_v22  ;;  %v562_v28 = vrot.slane %v546_v23, %v2075_v24  ;;  %v573_v33 = vrot.slane %v546_v23, %v2078_v25  ;;  %v584_v39 = vrot.slane %v546_v23, %v2087_v29  ;;  %v1611_v47 = vld [vmem:[%s2371_s5] ss:$0 sm:$0xff] }
  0x24   : > { %v469_v3 = vmul.f32 %v2021_v2, %v2021_v2  ;;  %1655 = vmatprep.subr.bf16.mxu1 %v1887_v6  ;;  %v679_v57 = vld [vmem:[%s2373_s7] sm:$0x3]  ;;  %v1001_v7 = vsub.s32 5, %v2066_v21 }
  0x25   : > { %1668 = vmatpush3.msk.msra.mxu0 %vm691_vm6, %v679_v57 }
  0x26   : > { %v471_v4 = vsel %vm470_vm0, %v469_v3, 0.0  ;;  %1672 = vmatprep.subr.bf16.mxu0 %v1887_v6 }
  0x27   : > { %472 = vadd.xlane.f32.xlu0 %v471_v4  ;;  %v990_v4 = vsub.s32 4, %v2066_v21 }
  0xb0   : > { %v473_v8 = vpop.xlane.xlu0 %472 }
  0xb1   : > { %v475_v9 = vmul.f32 0.03125, %v473_v8 }
  0xb3   : > { %v476_v10 = vadd.f32 1e-05, %v475_v9 }
  0xb5   : > { %1745 = vrsqrt.f32 %v476_v10 }
  0xc2   : > { %v1746_v11 = vpop.eup %1745 }
  0xc3   : > { %v478_v13 = vmul.f32 %v1746_v11, %v2021_v2  ;;  %v1012_v11 = vsub.s32 6, %v2066_v21 }
  0xc5   : > { %v485_v14 = vmul.f32 %v1607_v12, %v478_v13 }
  0xc7   : > { %v486_v15 = vpack.c.bf16 %v485_v14, %v485_v14 }
  0xc9   : > { %1652 = vmatmul.mubr.msk.bf16.vlgmr.msra.gmra.mxu1 %vm470_vm0, %v486_v15 }
  0xca   : > { %1663 = vmatprep.mubr.msk.bf16.mxu1 %vm1888_vm1, %v1887_v6  ;;  %1656 = vmatpush3.bf16.msra.mxu1 %v1736_v16 }
  0xcb   : > { %1657 = vmatprep.subr.bf16.mxu1 %v1887_v6 }
  0xce   : > { %1658 = vmatpush3.bf16.msra.mxu1 %v1737_v17 }
  0xcf   : > { %1659 = vmatprep.subr.bf16.mxu1 %v1887_v6 }
  0xd2   : > { %1660 = vmatpush3.bf16.msra.mxu1 %v1738_v18 }
  0xd3   : > { %1661 = vmatprep.subr.bf16.mxu1 %v1887_v6 }
  0xd6   : > { %1662 = vmatpush3.bf16.msra.mxu1 %v1739_v19  ;;  %v1023_v19 = vsub.s32 7, %v2066_v21 }
 0x189   : > { %v2081_v27 = vpop.f32.mrf.mxu1 }
 0x18a   : > { %v555_v30 = vrot.slane %v2081_v27, 5  ;;  %v566_v31 = vrot.slane %v2081_v27, 6  ;;  %v577_v32 = vrot.slane %v2081_v27, 7  ;;  %v553_v37 = vmul.f32 %v552_v26, %v2081_v27 }
 0x18b   : > { %v1653_v34 = vpop.f32.mrf.mxu1  ;;  %v1374_v8 = vsub.f32 0.0, %v2081_v27 }
 0x18c   : > { %v558_v35 = vsel %vm554_vm3, %v555_v30, 0.0  ;;  %v569_v36 = vsel %vm565_vm4, %v566_v31, 0.0  ;;  %v580_v41 = vsel %vm576_vm5, %v577_v32, 0.0 }
 0x18d   : > { %v563_v38 = vmul.f32 %v562_v28, %v558_v35  ;;  %v543_v40 = vpop.f32.mrf.mxu1  ;;  %v574_v43 = vmul.f32 %v573_v33, %v569_v36  ;;  %v585_v46 = vmul.f32 %v584_v39, %v580_v41  ;;  %v1375_v12 = vmul.f32 1.442695, %v1374_v8  ;;  %v1743_v41 = vld [vmem:[%s2377_s11 + $0x8] sm:$0xff]  }
 0x18e   : > { %v1742_v40 = vld [vmem:[%s2377_s11 + $0x10] sm:$0xff]  }
 0x18f   : > { %v564_v42 = vadd.f32 %v563_v38, %v553_v37  ;;  %v1654_v44 = vpop.f32.mrf.mxu1 }
 0x191   : > { %v575_v45 = vadd.f32 %v574_v43, %v564_v42  ;;  %v1744_v42 = vld [vmem:[%s2377_s11] sm:$0xff]  }
 0x193   : > { %v586_v48 = vadd.f32 %v585_v46, %v575_v45  ;;  %v791_v46 = vld [vmem:[%s2375_s9] sm:$0xff] }
 0x195   : > { %v594_v49 = vadd.f32 %v1611_v47, %v586_v48  ;;  %v793_v48 = vmul.f32 1.442695, %v791_v46 }
 0x197   : > { %v595_v50 = vsub.f32 0.0, %v594_v49 }
 0x199   : > { %v596_v51 = vmul.f32 1.442695, %v595_v50 }
 0x19b   : > { %1747 = vpow2.f32 %v596_v51 }
 0x1a8   : > { %v1748_v52 = vpop.eup %1747 }
 0x1a9   : > { %v598_v53 = vadd.f32 1.0, %v1748_v52 }
 0x1ab   : > { %1749 = vrcp.f32 %v598_v53 }
 0x1ac   : > { %1751 = vpow2.f32 %v1375_v12 }
 0x1b8   : > { %v1750_v54 = vpop.eup %1749 }
 0x1b9   : > { %v601_v55 = vmul.f32 %v1750_v54, %v594_v49  ;;  %v1752_v23 = vpop.eup %1751  ;;  %v1892_v54 = vmov 1966171168  }
 0x1ba   : > { %v1377_v26 = vadd.f32 1.0, %v1752_v23 }
 0x1bb   : > { %v602_v56 = vpack.c.bf16 %v601_v55, %v601_v55  ;;  %781 = vst.msk [vmem:[#allocation3] sm:$0xff] %vm635_vm2, %v601_v55  ;;  %v809_v55 = vunpack.c.l.s4 %v1892_v54 }
 0x1bc   : > { %1753 = vrcp.f32 %v1377_v26 }
 0x1bd   : > { %1664 = vmatmul.mubr.msk.bf16.vlgmr.msra.gmra.mxu1 %vm635_vm2, %v602_v56 }
 0x1c9   : > { %v1754_v32 = vpop.eup %1753 }
 0x1ca   : > { %v1380_v33 = vmul.f32 %v1754_v32, %v2081_v27  ;;  %v1741_v27 = vld [vmem:[%s2377_s11 + $0x18] sm:$0xff]  }
 0x27d   : > { %v673_v58 = vpop.f32.mrf.mxu1 }
 0x27e   : > { %787 = vrot.lane.b32.xlu1 %v673_v58, %s1889_s21  ;;  %782 = vrot.lane.b32.xlu0 %v673_v58, %s1890_s22  ;;  %s2290_s22 = sand.u32 1, %s1877_s26  }
 0x27f   : > { %1670 = vmatmul.mubr.msk.f32.vlgmr.msra.gmra.mxu0 %vm687_vm7, %v673_v58  ;;  %v1665_v59 = vpop.f32.mrf.mxu1  ;;  %s2380_s23 = sshll.u32 %s2290_s22, 3  ;;  %s1470_s21 = scalar_lea.sflag [#allocation11], %s2290_s22 }
 0x280   : > { %1680 = vmatprep.mubr.msk.bf16.mxu0 %vm1888_vm1, %v1887_v6  ;;  %1673 = vmatpush3.bf16.msra.mxu0 %v1741_v27  ;;  %v810_v59 = vunpack.c.0.s8 %v809_v55  ;;  %s455_s24 = scalar_lea.vmem [#allocation10], %s2380_s23  ;;  %s1801_s23 = scalar_lea.vmem %s1800_s2, 256 }
 0x281   : > { %v676_v60 = vpop.f32.mrf.mxu1  ;;  %1674 = vmatprep.subr.bf16.mxu0 %v1887_v6  ;;  %1462 = vst.msk [vmem:[%s455_s24] sm:$0xff] %vm470_vm0, %v2021_v2  ;;  %s1496_s20 = sshll.u32 %s455_s24, 4  ;;  %s1497_s20 = int_to_ptr.vmem [resolvable:$true] %s1496_s20 }
 0x282   : > { %s1795_s0 = scalar_lea.vmem %s1497_s20, 128  ;;  %p1802_p0 = scmp.lt.s32.totalorder %s1497_s20, %s1800_s2 }
 0x283   : > { %v1666_v61 = vpop.f32.mrf.mxu1  ;;  %p1796_p11 = scmp.ne.s32.totalorder %s1497_s20, %s1795_s0  ;;  %p1803_p1 = scmp.lt.s32.totalorder %s1801_s23, %s1795_s0 }
 0x284   : > { %1675 = vmatpush3.bf16.msra.mxu0 %v1742_v40 }
 0x285   : > { %1676 = vmatprep.subr.bf16.mxu0 %v1887_v6  ;;  %p1797_p12 = pnand %p1796_p11, %p2003_p5  ;;  %p1804_p2 = por %p1803_p1, %p1802_p0 }
 0x287   : > { %p1798_p13 = pneg %p1797_p12 }
 0x288   : > { %1677 = vmatpush3.bf16.msra.mxu0 %v1743_v41 }
 0x289   : > { %1678 = vmatprep.subr.bf16.mxu0 %v1887_v6  ;;  %v792_v6 = vld [vmem:[%s2375_s9 + $0x8] sm:$0xff]  ;;  %p1805_p3 = pnand %p1804_p2, %p1798_p13 }
 0x28a   : > { %v795_v58 = vmul.f32 1.442695, %v792_v6 }
 0x28c   : > { %1679 = vmatpush3.bf16.msra.mxu0 %v1744_v42 }
 0x2f0   : > { %v788_v62 = vpop.permute.xlu1 %787  ;;  %v783_v63 = vpop.permute.xlu0 %782 }
 0x2f1   : > { %790 = vst.msk [vmem:[#allocation5] sm:$0xff] %vm785_vm8, %v788_v62  ;;  %786 = vst.msk [vmem:[#allocation4] sm:$0xff] %vm785_vm8, %v783_v63  ;;  %v2152_v62 = vsub.s32 %v810_v59, %v2066_v21 }
 0x2f8   : > { %v804_v0 = vld [vmem:[#allocation4] sm:$0xff]  ;;  %v805_v14 = vld [vmem:[#allocation5] sm:$0xff] }
 0x2f9   : > { %v980_v1 = vrot.slane %v804_v0, %v2069_v22  ;;  %v947_v3 = vrot.slane %v804_v0, %v2075_v24  ;;  %v991_v5 = vrot.slane %v804_v0, %v990_v4  ;;  %v1002_v9 = vrot.slane %v804_v0, %v1001_v7 }
 0x2fa   : > { %v958_v10 = vrot.slane %v804_v0, %v2078_v25  ;;  %v1013_v13 = vrot.slane %v804_v0, %v1012_v11  ;;  %v1142_v15 = vrot.slane %v805_v14, %v2075_v24  ;;  %v969_v16 = vrot.slane %v804_v0, %v2087_v29 }
 0x2fb   : > { %982 = vbcast.lane.b32.xlu0 %v980_v1, 256  ;;  %949 = vbcast.lane.b32.xlu1 %v947_v3, 256  ;;  %v1153_v17 = vrot.slane %v805_v14, %v2078_v25  ;;  %v1164_v18 = vrot.slane %v805_v14, %v2087_v29  ;;  %v1024_v20 = vrot.slane %v804_v0, %v1023_v19 }
 0x2fc   : > { %v1175_v28 = vrot.slane %v805_v14, %v2069_v22  ;;  %v1186_v30 = vrot.slane %v805_v14, %v990_v4  ;;  %v1197_v25 = vrot.slane %v805_v14, %v1001_v7  ;;  %v1208_v29 = vrot.slane %v805_v14, %v1012_v11  ;;  %v1617_v22 = vld [vmem:[%s2374_s8] ss:$0 sm:$0xff] }
 0x2fd   : > { %v1219_v31 = vrot.slane %v805_v14, %v1023_v19  ;;  %v2173_v19 = vld [vmem:[#allocation3] sm:$0xff] }
 0x2ff   : > { %993 = vbcast.lane.b32.xlu0 %v991_v5, 256  ;;  %953 = vbcast.lane.b32.xlu1 %v947_v3, 264 }
 0x303   : > { %1004 = vbcast.lane.b32.xlu0 %v1002_v9, 256  ;;  %960 = vbcast.lane.b32.xlu1 %v958_v10, 256 }
 0x307   : > { %1015 = vbcast.lane.b32.xlu0 %v1013_v13, 256  ;;  %964 = vbcast.lane.b32.xlu1 %v958_v10, 264 }
 0x30b   : > { %1144 = vbcast.lane.b32.xlu0 %v1142_v15, 256  ;;  %971 = vbcast.lane.b32.xlu1 %v969_v16, 256 }
 0x30f   : > { %1155 = vbcast.lane.b32.xlu0 %v1153_v17, 256  ;;  %975 = vbcast.lane.b32.xlu1 %v969_v16, 264 }
 0x313   : > { %1166 = vbcast.lane.b32.xlu0 %v1164_v18, 256  ;;  %986 = vbcast.lane.b32.xlu1 %v980_v1, 264 }
 0x317   : > { %1026 = vbcast.lane.b32.xlu0 %v1024_v20, 256  ;;  %997 = vbcast.lane.b32.xlu1 %v991_v5, 264 }
 0x31b   : > { %1177 = vbcast.lane.b32.xlu0 %v1175_v28, 256  ;;  %1008 = vbcast.lane.b32.xlu1 %v1002_v9, 264 }
 0x31f   : > { %1188 = vbcast.lane.b32.xlu0 %v1186_v30, 256  ;;  %1019 = vbcast.lane.b32.xlu1 %v1013_v13, 264 }
 0x323   : > { %1199 = vbcast.lane.b32.xlu0 %v1197_v25, 256  ;;  %1148 = vbcast.lane.b32.xlu1 %v1142_v15, 264 }
 0x327   : > { %1210 = vbcast.lane.b32.xlu0 %v1208_v29, 256  ;;  %1159 = vbcast.lane.b32.xlu1 %v1153_v17, 264 }
 0x32b   : > { %1221 = vbcast.lane.b32.xlu0 %v1219_v31, 256  ;;  %1170 = vbcast.lane.b32.xlu1 %v1164_v18, 264 }
 0x32f   : > { %1382 = vrot.lane.b32.xlu0 %v1380_v33, %s1891_s17  ;;  %1030 = vbcast.lane.b32.xlu1 %v1024_v20, 264  ;;  %s2381_s17 = sshll.u32 %s1986_s29, 7 }
 0x330   : > { %s1494_s16 = scalar_lea.hbm %s2379_s13, %s2381_s17 }
 0x333   : > { %1181 = vbcast.lane.b32.xlu1 %v1175_v28, 264 }
 0x337   : > { %1192 = vbcast.lane.b32.xlu1 %v1186_v30, 264 }
 0x33b   : > { %1203 = vbcast.lane.b32.xlu1 %v1197_v25, 264 }
 0x33f   : > { %v761_v34 = vpop.f32.mrf.mxu0  ;;  %1214 = vbcast.lane.b32.xlu1 %v1208_v29, 264 }
 0x340   : > { %v762_v35 = vadd.f32 %v1617_v22, %v761_v34 }
 0x341   : > { %v1671_v36 = vpop.f32.mrf.mxu0 }
 0x342   : > { %v766_v37 = vand.u32 2147483647, %v762_v35  ;;  %v765_v53 = vmax.f32 %v762_v35, 0.0 }
 0x343   : > { %1225 = vbcast.lane.b32.xlu1 %v1219_v31, 264 }
 0x344   : > { %v767_v38 = vsub.f32 0.0, %v766_v37 }
 0x346   : > { %v768_v39 = vmul.f32 1.442695, %v767_v38 }
 0x348   : > { %1755 = vpow2.f32 %v768_v39 }
 0x355   : > { %v1756_v43 = vpop.eup %1755 }
 0x356   : > { %v770_v44 = vadd.f32 1.0, %v1756_v43  ;;  %v773_v45 = vmul.f32 -0.5, %v1756_v43  ;;  %v776_v49 = vand.u32 2147483647, %v1756_v43 }
 0x358   : > { %1757 = vlog2.f32 %v770_v44  ;;  %v774_v47 = vadd.f32 1.0, %v773_v45  ;;  %vm777_vm9 = vcmp.lt.f32.partialorder %v776_v49, 0.0004427343 }
 0x359   : > { %1759 = vpow2.f32 %v793_v48 }
 0x35a   : > { %v775_v52 = vmul.f32 %v1756_v43, %v774_v47  ;;  %1761 = vpow2.f32 %v795_v58 }
 0x365   : > { %v1758_v50 = vpop.eup %1757 }
 0x366   : > { %v772_v51 = vmul.f32 0.6931472, %v1758_v50  ;;  %v1760_v3 = vpop.eup %1759 }
 0x367   : > { %v2162_v9 = vsub.f32 0.0, %v1760_v3  ;;  %v1762_v18 = vpop.eup %1761 }
 0x368   : > { %v778_v56 = vsel %vm777_vm9, %v775_v52, %v772_v51  ;;  %v2185_v31 = vsub.f32 0.0, %v1762_v18 }
 0x369   : > { %v779_v57 = vadd.f32 %v778_v56, %v765_v53 }
 0x36b   : > { %780 = vst.msk [vmem:[#allocation2] sm:$0xff] %vm635_vm2, %v779_v57  ;;  %v1227_v57 = vld [vmem:[#allocation7] sm:$0xff] }
 0x36d   : > { %v2147_v60 = vpop.permute.xlu0 %982  ;;  %v2149_v61 = vpop.permute.xlu1 %949 }
 0x371   : > { %v2154_v63 = vpop.permute.xlu0 %993  ;;  %v2156_v0 = vpop.permute.xlu1 %953 }
 0x372   : > { %v802_v1 = vld [vmem:[#allocation2] sm:$0xff] }
 0x373   : > { %v814_v4 = vrot.slane %v802_v1, %v2152_v62  ;;  %v807_v10 = vcombine.high %v802_v1, %v802_v1  ;;  %v2177_v26 = vmul.f32 %v2173_v19, %v802_v1 }
 0x375   : > { %v2159_v5 = vpop.permute.xlu1 %960  ;;  %v830_v7 = vrot.slane %v814_v4, %v2152_v62  ;;  %v822_v8 = vcombine.high %v814_v4, %v814_v4  ;;  %v2164_v11 = vpop.permute.xlu0 %1004  ;;  %v821_v17 = vrot.slane %v807_v10, %v2152_v62  ;;  %v1041_v34 = vrot.slane %v2177_v26, %v2152_v62 }
 0x376   : > { %v1034_v10 = vcombine.high %v2177_v26, %v2177_v26 }
 0x377   : > { %v859_v21 = vrot.slane %v830_v7, %v2075_v24  ;;  %v844_v12 = vrot.slane %v822_v8, %v2152_v62  ;;  %v852_v13 = vcombine.high %v830_v7, %v830_v7  ;;  %v837_v29 = vrot.slane %v821_v17, %v2152_v62 }
 0x378   : > { %v823_v33 = vcombine.high %v821_v17, %v821_v17  ;;  %v1049_v44 = vcombine.high %v1041_v34, %v1041_v34  ;;  %v1057_v45 = vrot.slane %v1041_v34, %v2152_v62 }
 0x379   : > { %v2168_v14 = vpop.permute.xlu1 %964  ;;  %v896_v15 = vmul.f32 %v859_v21, %v2162_v9  ;;  %v863_v16 = vrot.slane %v844_v12, %v2075_v24  ;;  %v867_v23 = vrot.slane %v852_v13, %v2075_v24  ;;  %v2179_v28 = vpop.permute.xlu0 %1015  ;;  %v854_v36 = vcombine.high %v844_v12, %v844_v12 }
 0x37a   : > { %v875_v37 = vrot.slane %v837_v29, %v2075_v24  ;;  %v897_v38 = vmul.f32 %v859_v21, %v2185_v31  ;;  %v851_v41 = vrot.slane %v823_v33, %v2152_v62  ;;  %v853_v52 = vcombine.high %v837_v29, %v837_v29 }
 0x37b   : > { %v912_v20 = vmul.f32 1.442695, %v896_v15  ;;  %v898_v25 = vmul.f32 %v863_v16, %v2162_v9  ;;  %v900_v22 = vmul.f32 %v867_v23, %v2162_v9  ;;  %v871_v40 = vrot.slane %v854_v36, %v2075_v24 }
 0x37c   : > { %v914_v42 = vmul.f32 1.442695, %v897_v38  ;;  %v899_v43 = vmul.f32 %v863_v16, %v2185_v31  ;;  %v904_v48 = vmul.f32 %v875_v37, %v2162_v9  ;;  %v879_v51 = vrot.slane %v851_v41, %v2075_v24  ;;  %v1228_v38 = vld [vmem:[#allocation7 + $0x8] sm:$0xff] }
 0x37d   : > { %v2181_v30 = vpop.permute.xlu1 %971  ;;  %1763 = vpow2.f32 %v912_v20  ;;  %v916_v32 = vmul.f32 1.442695, %v898_v25  ;;  %v2194_v39 = vpop.permute.xlu0 %1144  ;;  %v920_v27 = vmul.f32 1.442695, %v900_v22  ;;  %v902_v47 = vmul.f32 %v871_v40, %v2162_v9 }
 0x37e   : > { %v918_v49 = vmul.f32 1.442695, %v899_v43  ;;  %v901_v53 = vmul.f32 %v867_v23, %v2185_v31  ;;  %v1071_v54 = vrot.slane %v1049_v44, %v2152_v62  ;;  %v1086_v55 = vrot.slane %v1057_v45, %v2075_v24 }
 0x37f   : > { %1765 = vpow2.f32 %v916_v32  ;;  %v924_v50 = vmul.f32 1.442695, %v902_v47  ;;  %v928_v58 = vmul.f32 1.442695, %v904_v48  ;;  %v855_v59 = vcombine.high %v851_v41, %v851_v41 }
 0x380   : > { %1767 = vpow2.f32 %v914_v42  ;;  %v903_v1 = vmul.f32 %v871_v40, %v2185_v31  ;;  %v906_v3 = vmul.f32 %v879_v51, %v2162_v9  ;;  %v883_v4 = vrot.slane %v853_v52, %v2075_v24 }
 0x381   : > { %v2190_v35 = vpop.permute.xlu1 %975  ;;  %1769 = vpow2.f32 %v920_v27  ;;  %v2208_v6 = vpop.permute.xlu0 %1155  ;;  %v922_v7 = vmul.f32 1.442695, %v901_v53  ;;  %v1123_v21 = vmul.f32 %v1086_v55, %v2149_v61  ;;  %v1090_v12 = vrot.slane %v1071_v54, %v2075_v24 }
 0x382   : > { %1771 = vpow2.f32 %v918_v49  ;;  %v1079_v15 = vcombine.high %v1057_v45, %v1057_v45  ;;  %v887_v17 = vrot.slane %v855_v59, %v2075_v24  ;;  %v926_v18 = vmul.f32 1.442695, %v903_v1 }
 0x383   : > { %1773 = vpow2.f32 %v924_v50  ;;  %v905_v20 = vmul.f32 %v875_v37, %v2185_v31  ;;  %v932_v26 = vmul.f32 1.442695, %v906_v3  ;;  %v908_v61 = vmul.f32 %v883_v4, %v2162_v9 }
 0x384   : > { %1775 = vpow2.f32 %v922_v7  ;;  %v1048_v32 = vrot.slane %v1034_v10, %v2152_v62  ;;  %v1081_v33 = vcombine.high %v1071_v54, %v1071_v54  ;;  %v1125_v22 = vmul.f32 %v1090_v12, %v2159_v5 }
 0x385   : > { %v2200_v46 = vpop.permute.xlu1 %986  ;;  %v2225_v25 = vpop.permute.xlu0 %1166  ;;  %1777 = vpow2.f32 %v928_v58  ;;  %v1094_v37 = vrot.slane %v1079_v15, %v2075_v24  ;;  %v930_v27 = vmul.f32 1.442695, %v905_v20  ;;  %v907_v40 = vmul.f32 %v879_v51, %v2185_v31 }
 0x386   : > { %1779 = vpow2.f32 %v926_v18  ;;  %v936_v43 = vmul.f32 1.442695, %v908_v61  ;;  %v910_v44 = vmul.f32 %v887_v17, %v2162_v9  ;;  %v1064_v5 = vrot.slane %v1048_v32, %v2152_v62 }
 0x387   : > { %1781 = vpow2.f32 %v932_v26  ;;  %v1124_v47 = vmul.f32 %v1086_v55, %v2156_v0  ;;  %v1098_v49 = vrot.slane %v1081_v33, %v2075_v24  ;;  %v1050_v50 = vcombine.high %v1048_v32, %v1048_v32 }
 0x388   : > { %v1127_v52 = vmul.f32 %v1094_v37, %v2181_v30  ;;  %1783 = vpow2.f32 %v930_v27  ;;  %v934_v58 = vmul.f32 1.442695, %v907_v40  ;;  %v909_v9 = vmul.f32 %v883_v4, %v2185_v31 }
 0x389   : > { %v2210_v56 = vpop.permute.xlu1 %997  ;;  %v2240_v54 = vpop.permute.xlu0 %1026  ;;  %1785 = vpow2.f32 %v936_v43  ;;  %v940_v3 = vmul.f32 1.442695, %v910_v44  ;;  %v1126_v55 = vmul.f32 %v1090_v12, %v2168_v14  ;;  %v1102_v30 = vrot.slane %v1064_v5, %v2075_v24 }
 0x38a   : > { %v1764_v8 = vpop.eup %1763  ;;  %v1078_v10 = vrot.slane %v1050_v50, %v2152_v62  ;;  %1787 = vpow2.f32 %v934_v58  ;;  %v938_v18 = vmul.f32 1.442695, %v909_v9  ;;  %v911_v4 = vmul.f32 %v887_v17, %v2185_v31 }
 0x38b   : > { %v1229_v13 = vmul.f32 %v1764_v8, %v1227_v57  ;;  %v1129_v8 = vmul.f32 %v1098_v49, %v2147_v60  ;;  %1789 = vpow2.f32 %v940_v3  ;;  %v1128_v14 = vmul.f32 %v1094_v37, %v2190_v35 }
 0x38c   : > { %v1766_v29 = vpop.eup %1765  ;;  %v1131_v60 = vmul.f32 %v1102_v30, %v2154_v63  ;;  %v1106_v32 = vrot.slane %v1078_v10, %v2075_v24  ;;  %v1080_v62 = vcombine.high %v1064_v5, %v1064_v5  ;;  %1791 = vpow2.f32 %v938_v18 }
 0x38d   : > { %v2219_v16 = vpop.permute.xlu1 %1008  ;;  %v2223_v23 = vadd.f32 %v1229_v13, %v1123_v21  ;;  %v1768_v41 = vpop.eup %1767  ;;  %v942_v27 = vmul.f32 1.442695, %v911_v4  ;;  %v1130_v17 = vmul.f32 %v1098_v49, %v2200_v46 }
 0x38e   : > { %v1770_v45 = vpop.eup %1769  ;;  %v1230_v48 = vmul.f32 %v1768_v41, %v1228_v38  ;;  %v1178_v26 = vpop.permute.xlu0 %1177  ;;  %v1133_v63 = vmul.f32 %v1106_v32, %v2164_v11 }
 0x38f   : > { %v1244_v34 = vmul.f32 %v1766_v29, %v2223_v23  ;;  %v1772_v59 = vpop.eup %1771  ;;  %1793 = vpow2.f32 %v942_v27 }
 0x390   : > { %v1232_v57 = vadd.f32 %v1230_v48, %v1124_v47  ;;  %v1774_v0 = vpop.eup %1773 }
 0x391   : > { %v2231_v36 = vpop.permute.xlu1 %1019  ;;  %v1246_v42 = vadd.f32 %v1244_v34, %v1125_v22  ;;  %v1776_v20 = vpop.eup %1775 }
 0x392   : > { %v1245_v7 = vmul.f32 %v1772_v59, %v1232_v57  ;;  %v1778_v29 = vpop.eup %1777  ;;  %v1189_v47 = vpop.permute.xlu0 %1188 }
 0x393   : > { %v1259_v53 = vmul.f32 %v1770_v45, %v1246_v42  ;;  %v1780_v31 = vpop.eup %1779  ;;  %v1248_v43 = vmul.f32 %v1246_v42, %v2208_v6  ;;  %v1110_v45 = vrot.slane %v1080_v62, %v2075_v24  ;;  %v1082_v42 = vcombine.high %v1078_v10, %v1078_v10 }
 0x394   : > { %v1247_v15 = vadd.f32 %v1245_v7, %v1126_v55  ;;  %v1782_v41 = vpop.eup %1781 }
 0x395   : > { %v1149_v51 = vpop.permute.xlu1 %1148  ;;  %v1261_v1 = vadd.f32 %v1259_v53, %v1127_v52  ;;  %v1233_v52 = vmul.f32 %v2223_v23, %v2194_v39  ;;  %v1784_v6 = vpop.eup %1783  ;;  %v1132_v53 = vmul.f32 %v1102_v30, %v2210_v56  ;;  %v1135_v39 = vmul.f32 %v1110_v45, %v2179_v28 }
 0x396   : > { %v1260_v12 = vmul.f32 %v1776_v20, %v1247_v15  ;;  %v1234_v35 = vmul.f32 %v1232_v57, %v1149_v51  ;;  %v1786_v57 = vpop.eup %1785  ;;  %v1114_v10 = vrot.slane %v1082_v42, %v2075_v24 }
 0x397   : > { %v1274_v21 = vmul.f32 %v1774_v0, %v1261_v1  ;;  %v1263_v5 = vmul.f32 %v1261_v1, %v2225_v25  ;;  %v1250_v25 = vsel %vm635_vm2, %v1248_v43, 0.0  ;;  %v1235_v55 = vsel %vm635_vm2, %v1233_v52, 0.0  ;;  %v1788_v30 = vpop.eup %1787 }
 0x398   : > { %v1262_v38 = vadd.f32 %v1260_v12, %v1128_v14  ;;  %v1236_v9 = vsel %vm635_vm2, %v1234_v35, 0.0  ;;  %v1790_v4 = vpop.eup %1789 }
 0x399   : > { %v1160_v13 = vpop.permute.xlu1 %1159  ;;  %v1276_v61 = vadd.f32 %v1274_v21, %v1129_v8  ;;  %v1265_v23 = vsel %vm635_vm2, %v1263_v5, 0.0  ;;  %v1134_v21 = vmul.f32 %v1106_v32, %v2219_v16  ;;  %v1792_v16 = vpop.eup %1791  ;;  %v1136_v32 = vmul.f32 %v1110_v45, %v2231_v36 }
 0x39a   : > { %v1249_v34 = vmul.f32 %v1247_v15, %v1160_v13  ;;  %v1275_v44 = vmul.f32 %v1780_v31, %v1262_v38  ;;  %v1200_v13 = vpop.permute.xlu0 %1199  ;;  %v1237_v15 = vadd.f32 %v1236_v9, %v1235_v55 }
 0x39b   : > { %v1289_v33 = vmul.f32 %v1778_v29, %v1276_v61  ;;  %v1278_v58 = vmul.f32 %v1276_v61, %v1178_v26  ;;  %v1137_v29 = vmul.f32 %v1114_v10, %v2240_v54 }
 0x39c   : > { %v1251_v46 = vsel %vm635_vm2, %v1249_v34, 0.0  ;;  %v1277_v49 = vadd.f32 %v1275_v44, %v1130_v17  ;;  %v1238_v34 = vrot.slane %v1237_v15, 4 }
 0x39d   : > { %v1171_v22 = vpop.permute.xlu1 %1170  ;;  %v1291_v40 = vadd.f32 %v1289_v33, %v1131_v60  ;;  %v1252_v3 = vadd.f32 %v1251_v46, %v1250_v25  ;;  %v1280_v28 = vsel %vm635_vm2, %v1278_v58, 0.0 }
 0x39e   : > { %v1264_v37 = vmul.f32 %v1262_v38, %v1171_v22  ;;  %v1290_v59 = vmul.f32 %v1784_v6, %v1277_v49  ;;  %v1211_v54 = vpop.permute.xlu0 %1210  ;;  %v1239_v36 = vadd.f32 %v1238_v34, %v1237_v15 }
 0x39f   : > { %v1304_v48 = vmul.f32 %v1782_v41, %v1291_v40  ;;  %v1293_v20 = vmul.f32 %v1291_v40, %v1189_v47  ;;  %v1253_v14 = vrot.slane %v1252_v3, 4  ;;  %v1794_v47 = vpop.eup %1793 }
 0x3a0   : > { %v1266_v11 = vsel %vm635_vm2, %v1264_v37, 0.0  ;;  %v1292_v8 = vadd.f32 %v1290_v59, %v1132_v53  ;;  %v1240_v59 = vrot.slane %v1239_v36, 2 }
 0x3a1   : > { %v1031_v50 = vpop.permute.xlu1 %1030  ;;  %v1306_v51 = vadd.f32 %v1304_v48, %v1133_v63  ;;  %v1267_v56 = vadd.f32 %v1266_v11, %v1265_v23  ;;  %v1295_v31 = vsel %vm635_vm2, %v1293_v20, 0.0  ;;  %v1254_v43 = vadd.f32 %v1253_v14, %v1252_v3 }
 0x3a2   : > { %v1305_v61 = vmul.f32 %v1788_v30, %v1292_v8  ;;  %v1138_v45 = vmul.f32 %v1114_v10, %v1031_v50 }
 0x3a3   : > { %v1319_v1 = vmul.f32 %v1786_v57, %v1306_v51  ;;  %v1268_v33 = vrot.slane %v1267_v56, 4  ;;  %v1308_v17 = vmul.f32 %v1306_v51, %v1200_v13  ;;  %v1255_v53 = vrot.slane %v1254_v43, 2 }
 0x3a4   : > { %v1307_v22 = vadd.f32 %v1305_v61, %v1134_v21  ;;  %v1241_v13 = vadd.f32 %v1240_v59, %v1239_v36 }
 0x3a5   : > { %v1182_v0 = vpop.permute.xlu1 %1181  ;;  %v1321_v18 = vadd.f32 %v1319_v1, %v1135_v39  ;;  %v1269_v44 = vadd.f32 %v1268_v33, %v1267_v56  ;;  %v1310_v46 = vsel %vm635_vm2, %v1308_v17, 0.0  ;;  %v1222_v39 = vpop.permute.xlu0 %1221  ;;  %v1256_v56 = vadd.f32 %v1255_v53, %v1254_v43 }
 0x3a6   : > { %v1279_v7 = vmul.f32 %v1277_v49, %v1182_v0  ;;  %v1320_v41 = vmul.f32 %v1792_v16, %v1307_v22 }
 0x3a7   : > { %v1334_v12 = vmul.f32 %v1790_v4, %v1321_v18  ;;  %v1323_v49 = vmul.f32 %v1321_v18, %v1211_v54  ;;  %v1270_v25 = vrot.slane %v1269_v44, 2  ;;  %v1257_v61 = vrot.slane %v1256_v56, 1 }
 0x3a8   : > { %v1281_v26 = vsel %vm635_vm2, %v1279_v7, 0.0  ;;  %v1322_v5 = vadd.f32 %v1320_v41, %v1136_v32 }
 0x3a9   : > { %v1282_v60 = vadd.f32 %v1281_v26, %v1280_v28  ;;  %v1193_v62 = vpop.permute.xlu1 %1192  ;;  %v1336_v38 = vadd.f32 %v1334_v12, %v1137_v29  ;;  %v1325_v50 = vsel %vm635_vm2, %v1323_v49, 0.0  ;;  %v1271_v10 = vadd.f32 %v1270_v25, %v1269_v44 }
 0x3aa   : > { %v1294_v24 = vmul.f32 %v1292_v8, %v1193_v62  ;;  %v1335_v42 = vmul.f32 %v1794_v47, %v1322_v5  ;;  %v1242_v62 = vrot.slane %v1241_v13, 1  ;;  %v1258_v32 = vadd.f32 %v1257_v61, %v1256_v56  ;;  %v1620_v47 = vld [vmem:[%s2376_s10] ss:$0 sm:$0xff] }
 0x3ab   : > { %v1283_v27 = vrot.slane %v1282_v60, 4  ;;  %1349 = vst.msk [vmem:[#allocation7] sm:$0xff] %vm635_vm2, %v1336_v38  ;;  %v1338_v3 = vmul.f32 %v1336_v38, %v1222_v39  ;;  %v1370_v49 = vmul.f32 %v1620_v47, %v2173_v19 }
 0x3ac   : > { %v1296_v40 = vsel %vm635_vm2, %v1294_v24, 0.0  ;;  %v1337_v9 = vadd.f32 %v1335_v42, %v1138_v45  ;;  %v1243_v17 = vadd.f32 %v1242_v62, %v1241_v13 }
 0x3ad   : > { %v1297_v35 = vadd.f32 %v1296_v40, %v1295_v31  ;;  %v1204_v37 = vpop.permute.xlu1 %1203  ;;  %v1284_v48 = vadd.f32 %v1283_v27, %v1282_v60  ;;  %v1340_v28 = vsel %vm635_vm2, %v1338_v3, 0.0  ;;  %v1272_v60 = vrot.slane %v1271_v10, 1 }
 0x3ae   : > { %v1309_v63 = vmul.f32 %v1307_v22, %v1204_v37  ;;  %1350 = vst.msk [vmem:[#allocation7 + $0x8] sm:$0xff] %vm635_vm2, %v1337_v9 }
 0x3af   : > { %v1298_v52 = vrot.slane %v1297_v35, 4  ;;  %v1285_v23 = vrot.slane %v1284_v48, 2  ;;  %v1273_v31 = vadd.f32 %v1272_v60, %v1271_v10 }
 0x3b0   : > { %v1311_v6 = vsel %vm635_vm2, %v1309_v63, 0.0 }
 0x3b1   : > { %v1299_v51 = vadd.f32 %v1298_v52, %v1297_v35  ;;  %v1312_v11 = vadd.f32 %v1311_v6, %v1310_v46  ;;  %v1215_v57 = vpop.permute.xlu1 %1214  ;;  %v1286_v15 = vadd.f32 %v1285_v23, %v1284_v48  ;;  %v1352_v35 = vsel %vm1351_vm10, %v1243_v17, %v1258_v32 }
 0x3b2   : > { %v1324_v58 = vmul.f32 %v1322_v5, %v1215_v57  ;;  %v1353_v63 = vsel %vm691_vm6, %v1352_v35, %v1273_v31 }
 0x3b3   : > { %v1313_v1 = vrot.slane %v1312_v11, 4  ;;  %v1300_v0 = vrot.slane %v1299_v51, 2  ;;  %v1287_v33 = vrot.slane %v1286_v15, 1 }
 0x3b4   : > { %v1326_v55 = vsel %vm635_vm2, %v1324_v58, 0.0 }
 0x3b5   : > { %v1314_v7 = vadd.f32 %v1313_v1, %v1312_v11  ;;  %v1327_v8 = vadd.f32 %v1326_v55, %v1325_v50  ;;  %v1226_v30 = vpop.permute.xlu1 %1225  ;;  %v1301_v20 = vadd.f32 %v1300_v0, %v1299_v51  ;;  %v1288_v40 = vadd.f32 %v1287_v33, %v1286_v15  ;;  %v1383_v51 = vpop.permute.xlu0 %1382 }
 0x3b6   : > { %v1339_v21 = vmul.f32 %v1337_v9, %v1226_v30 }
 0x3b7   : > { %v1315_v18 = vrot.slane %v1314_v7, 2  ;;  %v1328_v4 = vrot.slane %v1327_v8, 4  ;;  %v1302_v16 = vrot.slane %v1301_v20, 1  ;;  %v1355_v36 = vsel %vm1354_vm11, %v1353_v63, %v1288_v40 }
 0x3b8   : > { %v1341_v26 = vsel %vm635_vm2, %v1339_v21, 0.0 }
 0x3b9   : > { %v1316_v29 = vadd.f32 %v1315_v18, %v1314_v7  ;;  %v1329_v14 = vadd.f32 %v1328_v4, %v1327_v8  ;;  %v1342_v12 = vadd.f32 %v1341_v26, %v1340_v28  ;;  %v1303_v43 = vadd.f32 %v1302_v16, %v1301_v20 }
 0x3bb   : > { %v1330_v24 = vrot.slane %v1329_v14, 2  ;;  %v1343_v22 = vrot.slane %v1342_v12, 4  ;;  %v1317_v34 = vrot.slane %v1316_v29, 1  ;;  %v1357_v48 = vsel %vm1356_vm12, %v1355_v36, %v1303_v43 }
 0x3bd   : > { %v1331_v38 = vadd.f32 %v1330_v24, %v1329_v14  ;;  %v1344_v27 = vadd.f32 %v1343_v22, %v1342_v12  ;;  %v1318_v37 = vadd.f32 %v1317_v34, %v1316_v29 }
 0x3bf   : > { %v1332_v41 = vrot.slane %v1331_v38, 1  ;;  %v1345_v54 = vrot.slane %v1344_v27, 2  ;;  %v1359_v52 = vsel %vm1358_vm13, %v1357_v48, %v1318_v37 }
 0x3c1   : > { %v1346_v44 = vadd.f32 %v1345_v54, %v1344_v27  ;;  %v1333_v5 = vadd.f32 %v1332_v41, %v1331_v38 }
 0x3c3   : > { %v1347_v45 = vrot.slane %v1346_v44, 1  ;;  %v1361_v6 = vsel %vm1360_vm14, %v1359_v52, %v1333_v5 }
 0x3c5   : > { %v1348_v46 = vadd.f32 %v1347_v45, %v1346_v44 }
 0x3c7   : > { %v1363_v42 = vsel %vm1362_vm15, %v1361_v6, %v1348_v46 }
 0x3c8   : > { %v1371_v53 = vadd.f32 %v1370_v49, %v1363_v42 }
 0x3ca   : > { %1372 = vst.msk [vmem:[#allocation6] sm:$0xff] %vm635_vm2, %v1371_v53 }
 0x3d1   : > { %v1373_v11 = vld [vmem:[#allocation6] sm:$0xff] }
 0x3d2   : > { %v1385_v57 = vmul.f32 %v1383_v51, %v1373_v11 }
 0x3d4   : > { %v1386_v25 = vpack.c.bf16 %v1385_v57, %v1385_v57 }
 0x3d6   : > { %1681 = vmatmul.mubr.msk.bf16.vlgmr.msra.gmra.mxu0 %vm635_vm2, %v1386_v25 }
 0x3d7   : > { %1808 = shalt.err (!%p1805_p3)
}
 0x3d8   : > { %s1809_s3 = scalar_lea.hbm %s1494_s16, 128  ;;  %s1813_s15 = scalar_lea.hbm %s2379_s13, 256 }
 0x3d9   : > { %p1810_p4 = scmp.ne.s32.totalorder %s1494_s16, %s1809_s3  ;;  %p1814_p9 = scmp.lt.s32.totalorder %s1494_s16, %s2379_s13 }
 0x3da   : > { %p1815_p10 = scmp.lt.s32.totalorder %s1813_s15, %s1809_s3 }
 0x3db   : > { %p1811_p7 = pnand %p1810_p4, %p2003_p5 }
 0x3dc   : > { %p1816_p11 = por %p1815_p10, %p1814_p9 }
 0x3dd   : > { %p1812_p8 = pneg %p1811_p7 }
 0x3df   : > { %p1817_p12 = pnand %p1816_p11, %p1812_p8 }
 0x3e1   : > { %1820 = shalt.err (!%p1817_p12)
}
 0x3e2   : > { %1685 = dma.vmem_to_hbm [thread:$0]  (%p2003_p5), %s1497_s20, 128, %s1494_s16, %s1470_s21  }
 0x3e3   : > { %s2395_s0 = sshll.u32 %s2290_s22, 3  ;;  %s2396_s23 = sshll.u32 %s1986_s29, 7 }
 0x3e4   : > { %s448_s1 = scalar_lea.vmem [#allocation8], %s2395_s0  ;;  %s2323_s4 = scalar_lea.hbm %s2378_s12, %s2396_s23 }
 0x3e5   : > { %s1483_s2 = sshll.u32 %s448_s1, 4  ;;  %s1465_s3 = scalar_lea.sflag [#allocation9], %s2290_s22  ;;  %s2325_s2 = int_to_ptr.vmem [resolvable:$true] %s1483_s2 }
 0x3e6   : > { %s1821_s17 = scalar_lea.vmem %s2325_s2, 128  ;;  %s1894_s29 = smov [#allocation8]  }
 0x3e7   : > { %p1822_p13 = scmp.ne.s32.totalorder %s2325_s2, %s1821_s17  ;;  %s1825_s16 = sshll.u32 %s1894_s29, 4  ;;  %s1826_s16 = int_to_ptr.vmem [resolvable:$false] %s1825_s16 }
 0x3e8   : > { %s1827_s20 = scalar_lea.vmem %s1826_s16, 256  ;;  %p1828_p2 = scmp.lt.s32.totalorder %s2325_s2, %s1826_s16 }
 0x3e9   : > { %p1823_p0 = pnand %p1822_p13, %p2003_p5  ;;  %p1829_p3 = scmp.lt.s32.totalorder %s1827_s20, %s1821_s17 }
 0x3eb   : > { %p1824_p1 = pneg %p1823_p0  ;;  %p1830_p4 = por %p1829_p3, %p1828_p2 }
 0x3ed   : > { %p1831_p7 = pnand %p1830_p4, %p1824_p1 }
 0x496   : > { %v1456_v2 = vpop.f32.mrf.mxu0 }
 0x497   : > { %1463 = vst.msk [vmem:[%s448_s1] sm:$0xff] %vm470_vm0, %v1456_v2 }
 0x498   : > { %v1682_v19 = vpop.f32.mrf.mxu0 }
 0x499   : > { %1834 = shalt.err (!%p1831_p7)
}
 0x49a   : > { %s1835_s21 = scalar_lea.hbm %s2323_s4, 128  ;;  %s1839_s0 = scalar_lea.hbm %s2378_s12, 256 }
 0x49b   : > { %p1836_p8 = scmp.ne.s32.totalorder %s2323_s4, %s1835_s21  ;;  %p1840_p11 = scmp.lt.s32.totalorder %s2323_s4, %s2378_s12 }
 0x49c   : > { %p1841_p12 = scmp.lt.s32.totalorder %s1839_s0, %s1835_s21 }
 0x49d   : > { %p1837_p9 = pnand %p1836_p8, %p2003_p5 }
 0x49e   : > { %p1842_p13 = por %p1841_p12, %p1840_p11 }
 0x49f   : > { %p1838_p10 = pneg %p1837_p9 }
 0x4a1   : > { %p1843_p0 = pnand %p1842_p13, %p1838_p10 }
 0x4a3   : > { %1846 = shalt.err (!%p1843_p0)
}
 0x4a4   : > { %1684 = dma.vmem_to_hbm [thread:$0]  (%p2003_p5), %s2325_s2, 128, %s2323_s4, %s1465_s3   ;;  %v1459_v58 = vpop.f32.mrf.mxu0 }
 0x4a6   : > { %v1683_v9 = vpop.f32.mrf.mxu0 }
 0x4a7 PF: > { %p1695_p1 = scmp.ge.s32.totalorder %s1885_s28, 2  ;;  %s1508_s24 = sand.u32 1, %s1873_s25  }
 0x4a8   : > { %s1509_s30 = scalar_lea.sflag [#allocation9], %s1508_s24 }
 0x4a9   : > { %p1689_p2 = pnand %p1695_p1, %p2007_p6 }
 0x4ab   : > { %p1690_p3 = pneg %p1689_p2 }
 0x4ad   : > { %1864 = dma.done.wait (%p1690_p3), %s1509_s30, 128  }
 0x4ae   : > { %1866 = vsyncadd (%p1690_p3), %s1509_s30, 4294967168  ;;  %s1518_s17 = scalar_lea.sflag [#allocation11], %s1508_s24 }
 0x4af   : > { %1868 = dma.done.wait (%p1690_p3), %s1518_s17, 128  }
 0x4b0   : > { %1870 = vsyncadd (%p1690_p3), %s1518_s17, 4294967168  ;;  %s2397_s18 = sld [smem:[#allocation14_spill]]  ;;  %p27_p5 = scmp.ge.s32.totalorder %s1990_s14, 4  }
 0x4b1   : > { %s2398_s25 = smov %s1877_s26  ;;  %s2399_s26 = smov %s1881_s27 }
 0x4b2   : > { %s2401_s28 = smov %s1990_s14  ;;  %29 = sbr.rel (!%p27_p5) target bundleno = 11 (0xb), region = 123 }
 0x4b6   : > { %s2400_s27 = smov %s2397_s18 }
 0x4b7   :  { %1523 = vsyncpa [#allocation9], 1 }
 0x4b8   :  { %1525 = vsyncpa [#allocation9 + $0x1], 1 }
 0x4b9   :  { %1526 = vsyncpa [#allocation11], 1 }
 0x4ba   :  { %1528 = vsyncpa [#allocation11 + $0x1], 1 }

</bundles_post_ra>
